<compile_context>
chip_gen: v6e
topology: v6e:2x2x1
jax: 0.10.0
libtpu: 0.0.40
codegen_flags: <defaults>
</compile_context>

<pallas_src>
import functools

import jax
import jax.numpy as jnp
from jax.experimental import pallas as pl
from jax.experimental.pallas import tpu as pltpu

_BN_EPS = 1e-5
_INV_SQRT2 = 0.7071067811865476


def _round_up(x, m):
    return (x + m - 1) // m * m


def _sublane(dtype):
    return 16 if jnp.dtype(dtype).itemsize == 2 else 8


def _pick_b_tile(n):
    # Amortize the fixed per-grid-step cost over several samples while keeping
    # >= 4 grid steps so both v7x TensorCores stay busy and the BlockSpec
    # double-buffer pipeline has something to overlap.
    for d in (8, 4, 2):
        if n % d == 0 and n // d >= 4:
            return d
    return 1


# ---------------------------------------------------------------------------
# In-kernel math
# ---------------------------------------------------------------------------

def _erf(x):
    # Abramowitz & Stegun 7.1.26 (|err| <= 1.5e-7).  Exact divide: the previous
    # approx-reciprocal version cost ~5e-3 end-to-end error.
    a1, a2, a3, a4, a5 = (0.254829592, -0.284496736, 1.421413741,
                          -1.453152027, 1.061405429)
    p = 0.3275911
    sign = jnp.where(x >= 0.0, 1.0, -1.0)
    ax = jnp.abs(x)
    t = 1.0 / (1.0 + p * ax)
    poly = t * (a1 + t * (a2 + t * (a3 + t * (a4 + t * a5))))
    return sign * (1.0 - poly * jnp.exp(-ax * ax))


def _gelu_exact(x):
    # TODO(synk): lax.erf may not lower in Mosaic; the polynomial keeps the
    # error ~2 orders of magnitude below the checked tolerance.
    return 0.5 * x * (1.0 + _erf(x * _INV_SQRT2))


def _conv2d_dot(x_val, w2d, *, k, w_store, m_cols):
    """Valid conv as ONE MXU dot on the lane-major flattened layout.

    x_val: [C_in_p, L]  activation plane (channels on sublanes, flat H*W on
           lanes), in its native storage dtype.
    w2d:   [C_out_p, k*k*C_in_p]  packed weights (same dtype).
    Returns the f32 "extended" conv output [C_out_p, m_cols]; column
    m = ho*w_store + wo.  Columns with wo >= the valid width are garbage and
    are masked from statistics / never read by valid downstream outputs.
    """
    wins = []
    for dh in range(k):
        for dw in range(k):
            off = dh * w_store + dw
            wins.append(x_val[:, off:off + m_cols])
    stacked = jnp.concatenate(wins, axis=0)            # [k*k*C_in_p, m_cols]
    return jnp.dot(w2d, stacked, preferred_element_type=jnp.float32)


def _col_valid(m_cols, w_store, w_valid):
    # (col mod w_store) < w_valid, via f32 floor-divide (exact for col < 2^24
    # and avoids vector integer rem).
    col = jax.lax.broadcasted_iota(jnp.int32, (1, m_cols), 1).astype(jnp.float32)
    row = jnp.floor(col / float(w_store))
    return (col - row * float(w_store)) < (float(w_valid) - 0.5)


def _store_stats(stats_ref, b, y, valid):
    # Per-channel sum and sum-of-squares over the valid output columns, merged
    # into a single [C_out_p, 2] slab of the stats output stream.
    s = jnp.sum(jnp.where(valid, y, 0.0), axis=1, keepdims=True)
    ss = jnp.sum(jnp.where(valid, y * y, 0.0), axis=1, keepdims=True)
    stats_ref[b, :, 0:1] = s
    stats_ref[b, :, 1:2] = ss


# ---------------------------------------------------------------------------
# Kernels
# ---------------------------------------------------------------------------

def _stats_kernel(x_ref, w_ref, stats_ref, *, k, w_store, m_cols,
                  w_valid_out, b_tile):
    # Pass 1: per-sample per-channel sum / sum-of-squares of the conv output.
    w2d = w_ref[...]
    valid = _col_valid(m_cols, w_store, w_valid_out)
    for b in range(b_tile):
        y = _conv2d_dot(x_ref[b], w2d, k=k, w_store=w_store, m_cols=m_cols)
        _store_stats(stats_ref, b, y, valid)


def _apply_kernel(x_ref, w_ref, scale_ref, shift_ref, out_ref, *, k, w_store,
                  m_cols, b_tile):
    # Pass 2: conv + folded BN (scale/shift) + exact-erf GELU.
    w2d = w_ref[...]
    scale = scale_ref[...]
    shift = shift_ref[...]
    tail = out_ref.shape[2] - m_cols
    for b in range(b_tile):
        y = _conv2d_dot(x_ref[b], w2d, k=k, w_store=w_store, m_cols=m_cols)
        y = _gelu_exact(y * scale + shift)
        if tail:
            y = jnp.concatenate(
                [y, jnp.zeros((y.shape[0], tail), jnp.float32)], axis=1)
        out_ref[b] = y.astype(out_ref.dtype)


def _apply_stats_kernel(x_ref, w_ref, scale_ref, shift_ref, wnext_ref,
                        out_ref, stats_ref, *, k, w_store, m_cols,
                        m_cols_next, w_valid_next, b_tile):
    # Pass 2 of layer i fused with pass 1 of layer i+1: emit the next layer's
    # batch statistics while the activation tile is still resident in VMEM
    # (halves activation HBM reads and pallas_call count per layer).
    w2d = w_ref[...]
    w2d_next = wnext_ref[...]
    scale = scale_ref[...]
    shift = shift_ref[...]
    tail = out_ref.shape[2] - m_cols
    valid_next = _col_valid(m_cols_next, w_store, w_valid_next)
    for b in range(b_tile):
        y = _conv2d_dot(x_ref[b], w2d, k=k, w_store=w_store, m_cols=m_cols)
        y = _gelu_exact(y * scale + shift)
        if tail:
            y = jnp.concatenate(
                [y, jnp.zeros((y.shape[0], tail), jnp.float32)], axis=1)
        y_store = y.astype(out_ref.dtype)
        out_ref[b] = y_store
        # Next layer's conv on the just-stored (storage-dtype) activation;
        # identical to what the next apply pass will recompute, so BN is
        # exactly self-consistent.
        y2 = _conv2d_dot(y_store, w2d_next, k=k, w_store=w_store,
                         m_cols=m_cols_next)
        _store_stats(stats_ref, b, y2, valid_next)


# ---------------------------------------------------------------------------
# pallas_call wrappers
# ---------------------------------------------------------------------------

def _parallel():
    return pltpu.CompilerParams(dimension_semantics=("parallel",))


def _call_stats(x_flat, w2d, *, k, w_store, m_cols, w_valid_out, b_tile):
    n, c_in_p, l_in = x_flat.shape
    c_out_p = w2d.shape[0]
    kern = functools.partial(_stats_kernel, k=k, w_store=w_store,
                             m_cols=m_cols, w_valid_out=w_valid_out,
                             b_tile=b_tile)
    return pl.pallas_call(
        kern,
        grid=(n // b_tile,),
        in_specs=[pl.BlockSpec((b_tile, c_in_p, l_in), lambda i: (i, 0, 0)),
                  pl.BlockSpec(w2d.shape, lambda i: (0, 0))],
        out_specs=pl.BlockSpec((b_tile, c_out_p, 2), lambda i: (i, 0, 0)),
        out_shape=jax.ShapeDtypeStruct((n, c_out_p, 2), jnp.float32),
        compiler_params=_parallel(),
    )(x_flat, w2d)


def _call_apply(x_flat, w2d, scale, shift, *, k, w_store, m_cols, l_out,
                b_tile, out_dtype):
    n, c_in_p, l_in = x_flat.shape
    c_out_p = w2d.shape[0]
    kern = functools.partial(_apply_kernel, k=k, w_store=w_store,
                             m_cols=m_cols, b_tile=b_tile)
    return pl.pallas_call(
        kern,
        grid=(n // b_tile,),
        in_specs=[pl.BlockSpec((b_tile, c_in_p, l_in), lambda i: (i, 0, 0)),
                  pl.BlockSpec(w2d.shape, lambda i: (0, 0)),
                  pl.BlockSpec(scale.shape, lambda i: (0, 0)),
                  pl.BlockSpec(shift.shape, lambda i: (0, 0))],
        out_specs=pl.BlockSpec((b_tile, c_out_p, l_out), lambda i: (i, 0, 0)),
        out_shape=jax.ShapeDtypeStruct((n, c_out_p, l_out), out_dtype),
        compiler_params=_parallel(),
    )(x_flat, w2d, scale, shift)


def _call_apply_stats(x_flat, w2d, scale, shift, w2d_next, *, k, w_store,
                      m_cols, l_out, m_cols_next, w_valid_next, b_tile,
                      out_dtype):
    n, c_in_p, l_in = x_flat.shape
    c_out_p = w2d.shape[0]
    c_next_p = w2d_next.shape[0]
    kern = functools.partial(_apply_stats_kernel, k=k, w_store=w_store,
                             m_cols=m_cols, m_cols_next=m_cols_next,
                             w_valid_next=w_valid_next, b_tile=b_tile)
    return pl.pallas_call(
        kern,
        grid=(n // b_tile,),
        in_specs=[pl.BlockSpec((b_tile, c_in_p, l_in), lambda i: (i, 0, 0)),
                  pl.BlockSpec(w2d.shape, lambda i: (0, 0)),
                  pl.BlockSpec(scale.shape, lambda i: (0, 0)),
                  pl.BlockSpec(shift.shape, lambda i: (0, 0)),
                  pl.BlockSpec(w2d_next.shape, lambda i: (0, 0))],
        out_specs=(pl.BlockSpec((b_tile, c_out_p, l_out), lambda i: (i, 0, 0)),
                   pl.BlockSpec((b_tile, c_next_p, 2), lambda i: (i, 0, 0))),
        out_shape=(jax.ShapeDtypeStruct((n, c_out_p, l_out), out_dtype),
                   jax.ShapeDtypeStruct((n, c_next_p, 2), jnp.float32)),
        compiler_params=_parallel(),
    )(x_flat, w2d, scale, shift, w2d_next)


# ---------------------------------------------------------------------------
# Host-side helpers (layout packing, weight packing, BN folding)
# ---------------------------------------------------------------------------

def _prep_weight(wgt, c_in_p, c_out_p, dtype):
    """[C_out, C_in, k, k] -> lane-dense [C_out_p, k*k*C_in_p] (zero-padded)."""
    c_out, c_in, k, _ = wgt.shape
    w = jnp.transpose(wgt, (2, 3, 1, 0))                 # [k, k, C_in, C_out]
    w = jnp.pad(w, ((0, 0), (0, 0), (0, c_in_p - c_in), (0, c_out_p - c_out)))
    w = w.reshape(k * k * c_in_p, c_out_p)
    return jnp.transpose(w).astype(dtype)                # [C_out_p, k*k*C_in_p]


def _bn_affine(stats, gamma, beta, count, c_out, c_out_p):
    """Fold batch statistics + gamma/beta into per-channel scale & shift."""
    tot = jnp.sum(stats, axis=0)                         # [C_out_p, 2]
    mean = tot[:, 0] / count
    # TODO(synk): E[y^2]-mean^2 can cancel for huge counts; fine at these sizes.
    var = jnp.maximum(tot[:, 1] / count - mean * mean, 0.0)
    gamma_p = jnp.pad(gamma.astype(jnp.float32), (0, c_out_p - c_out),
                      constant_values=1.0)
    beta_p = jnp.pad(beta.astype(jnp.float32), (0, c_out_p - c_out))
    inv_std = jax.lax.rsqrt(var + _BN_EPS)
    scale = (gamma_p * inv_std).reshape(c_out_p, 1)
    shift = (beta_p - mean * gamma_p * inv_std).reshape(c_out_p, 1)
    return scale, shift


def _pack(x_nchw, k, dtype):
    """NCHW -> [N, C_pad, L] lane-major flattened layout (+ shift slack)."""
    n, c, h, w = x_nchw.shape
    c_p = _round_up(c, _sublane(dtype))
    l = _round_up(h * w + k - 1, 128)
    flat = x_nchw.reshape(n, c, h * w)
    flat = jnp.pad(flat, ((0, 0), (0, c_p - c), (0, l - h * w)))
    return flat.astype(dtype), h, w, w                   # flat, H, w_store, w_valid


def _unpack(flat, c, h, w_store, w_valid):
    n = flat.shape[0]
    y = flat[:, :c, :h * w_store].reshape(n, c, h, w_store)
    return y[:, :, :, :w_valid]


# ---------------------------------------------------------------------------
# Full block
# ---------------------------------------------------------------------------

def conv_block_multi(x, params, *, kernel_size, paddings=0,
                     dtype=jnp.float32):
    """(Conv2d -> BatchNorm2d(training) -> GELU) x len(params); x is NCHW f32.

    NOTE: the conv bias is exactly cancelled by training-mode BatchNorm (the
    batch mean absorbs it, variance is unaffected), so it never enters a
    kernel; it is kept in `params` for module fidelity.
    """
    k = kernel_size
    num_layers = len(params)
    if isinstance(paddings, int):
        paddings = (paddings,) * num_layers
    n = x.shape[0]
    b_tile = _pick_b_tile(n)
    c_sub = _sublane(dtype)

    flat = None
    h = w_store = w_valid = None
    prev_c = x.shape[1]
    pending_stats = None          # this layer's pass-1 stats if fused earlier

    for layer in range(num_layers):
        wgt, _bias, gamma, beta = params[layer]
        pad = int(paddings[layer])
        c_out, c_in = wgt.shape[0], wgt.shape[1]
        assert c_in == prev_c

        # (Re)pack on entry, when spatial zero-padding is requested, or when
        # dead lane columns exceed ~25% of the stored width.  A repack only
        # changes storage layout (valid values preserved exactly), so pending
        # fused statistics remain valid across it.
        repack = (flat is None or pad != 0 or 4 * w_valid < 3 * w_store)
        if repack:
            cur = (x if flat is None else
                   _unpack(flat, prev_c, h, w_store, w_valid)
                   .astype(jnp.float32))
            if pad:
                cur = jnp.pad(cur, ((0, 0), (0, 0), (pad, pad), (pad, pad)))
            flat, h, w_store, w_valid = _pack(cur, k, dtype)

        c_in_p = _round_up(c_in, c_sub)
        c_out_p = _round_up(c_out, c_sub)
        assert flat.shape[1] == c_in_p

        h_out, w_valid_out = h - k + 1, w_valid - k + 1
        assert h_out >= 1 and w_valid_out >= 1
        m_cols = h_out * w_store
        l_out = _round_up(m_cols + k - 1, 128)

        w2d = _prep_weight(wgt, c_in_p, c_out_p, dtype)

        # ---- pass 1 (skipped when the previous fused call produced it) ------
        if pending_stats is None:
            stats = _call_stats(flat, w2d, k=k, w_store=w_store,
                                m_cols=m_cols, w_valid_out=w_valid_out,
                                b_tile=b_tile)
        else:
            stats = pending_stats
        count = float(n * h_out * w_valid_out)
        scale, shift = _bn_affine(stats, gamma, beta, count, c_out, c_out_p)

        # ---- pass 2, fused with the next layer's pass 1 when the layout is
        # carried unchanged (no spatial padding on the next layer) ------------
        fuse = (layer + 1 < num_layers and int(paddings[layer + 1]) == 0
                and h_out >= k and w_valid_out >= k)
        if fuse:
            w_next = params[layer + 1][0]
            c_next_p = _round_up(w_next.shape[0], c_sub)
            w2d_next = _prep_weight(w_next, c_out_p, c_next_p, dtype)
            flat, pending_stats = _call_apply_stats(
                flat, w2d, scale, shift, w2d_next, k=k, w_store=w_store,
                m_cols=m_cols, l_out=l_out,
                m_cols_next=(h_out - k + 1) * w_store,
                w_valid_next=w_valid_out - k + 1,
                b_tile=b_tile, out_dtype=dtype)
        else:
            flat = _call_apply(flat, w2d, scale, shift, k=k, w_store=w_store,
                               m_cols=m_cols, l_out=l_out, b_tile=b_tile,
                               out_dtype=dtype)
            pending_stats = None

        h, w_valid, prev_c = h_out, w_valid_out, c_out

    return _unpack(flat, prev_c, h, w_store, w_valid).astype(jnp.float32)


# ---------------------------------------------------------------------------
# Params + pure-JAX reference (mirrors the PyTorch module in train mode)
# ---------------------------------------------------------------------------

def init_params(key, in_channels, process_channels, layers, kernel_size):
    params = []
    c_in = in_channels
    for _ in range(layers):
        key, kw, kb = jax.random.split(key, 3)
        fan_in = c_in * kernel_size * kernel_size
        bound = float(fan_in) ** -0.5
        w = jax.random.uniform(kw, (process_channels, c_in, kernel_size,
                                    kernel_size), jnp.float32, -bound, bound)
        b = jax.random.uniform(kb, (process_channels,), jnp.float32,
                               -bound, bound)
        gamma = jnp.ones((process_channels,), jnp.float32)
        beta = jnp.zeros((process_channels,), jnp.float32)
        params.append((w, b, gamma, beta))
        c_in = process_channels
    return params


def _reference(x, params, kernel_size, paddings):
    for (w, b, gamma, beta), pad in zip(params, paddings):
        y = jax.lax.conv_general_dilated(
            x, w, window_strides=(1, 1), padding=[(pad, pad), (pad, pad)],
            dimension_numbers=('NCHW', 'OIHW', 'NCHW'))
        y = y + b[None, :, None, None]
        mean = jnp.mean(y, axis=(0, 2, 3), keepdims=True)
        var = jnp.mean((y - mean) ** 2, axis=(0, 2, 3), keepdims=True)
        y = (y - mean) * jax.lax.rsqrt(var + _BN_EPS)
        y = y * gamma[None, :, None, None] + beta[None, :, None, None]
        x = jax.nn.gelu(y, approximate=False)
    return x


if __name__ == "__main__":
    key = jax.random.PRNGKey(0)

    def run_case(key, shape, in_c, proc_c, layers, k, pad, dtype, tol):
        key, kx, kp = jax.random.split(key, 3)
        x = jax.random.normal(kx, shape, jnp.float32)
        params = init_params(kp, in_c, proc_c, layers, k)
        paddings = (pad,) * layers
        ref = _reference(x, params, k, paddings)
        fwd = jax.jit(functools.partial(conv_block_multi, kernel_size=k,
                                        paddings=paddings, dtype=dtype))
        out = jax.block_until_ready(fwd(x, params))
        assert out.shape == ref.shape, (out.shape, ref.shape)
        err = float(jnp.max(jnp.abs(out - ref)))
        assert err < tol, (
            f"mismatch (dtype={jnp.dtype(dtype).name}, shape={shape}): {err}")
        return key

    # Base config implied by the module: batch 2, 4->8 channels, 16x16, 2 layers.
    key = run_case(key, (2, 4, 16, 16), 4, 8, 2, 3, 0, jnp.float32, 3e-3)
    # bf16 storage / MXU operands (f32 accumulation, f32 BN/GELU): halves
    # activation DMA on all generations.  Tolerance reflects ~2^-8 storage
    # precision amplified through two conv+BN layers.
    key = run_case(key, (2, 4, 16, 16), 4, 8, 2, 3, 0, jnp.bfloat16, 2e-1)
    # Deeper / wider batch: exercises b_tile=2 samples per grid step, the
    # fused apply+next-stats chain, and the dead-width repack before layer 3.
    key = run_case(key, (8, 4, 12, 12), 4, 8, 3, 3, 0, jnp.float32, 3e-3)

    print("KERNEL_OK")
</pallas_src>

<mosaic_0001>
module attributes {stable_mosaic.version = 11 : i64} {
  func.func @_stats_kernel(%arg0: i32, %arg1: memref<1x8x384xf32, #tpu.memory_space<vmem>>, %arg2: memref<8x72xf32, #tpu.memory_space<vmem>>, %arg3: memref<1x8x2xf32, #tpu.memory_space<vmem>>) attributes {dimension_semantics = [#tpu.dimension_semantics<parallel>], iteration_bounds = array<i64: 2>, scalar_prefetch = 0 : i64, scratch_operands = 0 : i64, tpu.core_type = #tpu.core_type<tc>, window_params = [{transform_indices = @transform_0, window_bounds = array<i64: 1, 8, 384>}, {pipeline_mode = #tpu.pipeline_mode<synchronous>, transform_indices = @transform_1, window_bounds = array<i64: 8, 72>}, {transform_indices = @transform_2, window_bounds = array<i64: 1, 8, 2>}]} {
    %c0 = arith.constant 0 : index
    %c0_0 = arith.constant 0 : index
    %0 = vector.load %arg2[%c0, %c0_0] : memref<8x72xf32, #tpu.memory_space<vmem>>, vector<8x72xf32>
    %1 = tpu.iota {dimensions = array<i32: 1>} : vector<1x224xi32>
    %2 = arith.sitofp %1 : vector<1x224xi32> to vector<1x224xf32>
    %cst = arith.constant 1.600000e+01 : f32
    %3 = vector.broadcast %cst : f32 to vector<1x224xf32>
    %4 = arith.divf %2, %3 : vector<1x224xf32>
    %5 = math.floor %4 : vector<1x224xf32>
    %cst_1 = arith.constant 1.600000e+01 : f32
    %6 = vector.broadcast %cst_1 : f32 to vector<1x224xf32>
    %7 = arith.mulf %5, %6 : vector<1x224xf32>
    %8 = arith.subf %2, %7 : vector<1x224xf32>
    %cst_2 = arith.constant 1.350000e+01 : f32
    %9 = vector.broadcast %cst_2 : f32 to vector<1x224xf32>
    %10 = arith.cmpf olt, %8, %9 : vector<1x224xf32>
    %c0_3 = arith.constant 0 : index
    %c0_4 = arith.constant 0 : index
    %c0_5 = arith.constant 0 : index
    %11 = vector.load %arg1[%c0_3, %c0_4, %c0_5] : memref<1x8x384xf32, #tpu.memory_space<vmem>>, vector<1x8x384xf32>
    %12 = vector.shape_cast %11 : vector<1x8x384xf32> to vector<8x384xf32>
    %13 = vector.extract_strided_slice %12 {offsets = [0, 0], sizes = [8, 224], strides = [1, 1]} : vector<8x384xf32> to vector<8x224xf32>
    %14 = vector.extract_strided_slice %12 {offsets = [0, 1], sizes = [8, 224], strides = [1, 1]} : vector<8x384xf32> to vector<8x224xf32>
    %15 = vector.extract_strided_slice %12 {offsets = [0, 2], sizes = [8, 224], strides = [1, 1]} : vector<8x384xf32> to vector<8x224xf32>
    %16 = vector.extract_strided_slice %12 {offsets = [0, 16], sizes = [8, 224], strides = [1, 1]} : vector<8x384xf32> to vector<8x224xf32>
    %17 = vector.extract_strided_slice %12 {offsets = [0, 17], sizes = [8, 224], strides = [1, 1]} : vector<8x384xf32> to vector<8x224xf32>
    %18 = vector.extract_strided_slice %12 {offsets = [0, 18], sizes = [8, 224], strides = [1, 1]} : vector<8x384xf32> to vector<8x224xf32>
    %19 = vector.extract_strided_slice %12 {offsets = [0, 32], sizes = [8, 224], strides = [1, 1]} : vector<8x384xf32> to vector<8x224xf32>
    %20 = vector.extract_strided_slice %12 {offsets = [0, 33], sizes = [8, 224], strides = [1, 1]} : vector<8x384xf32> to vector<8x224xf32>
    %21 = vector.extract_strided_slice %12 {offsets = [0, 34], sizes = [8, 224], strides = [1, 1]} : vector<8x384xf32> to vector<8x224xf32>
    %22 = tpu.concatenate %13, %14, %15, %16, %17, %18, %19, %20, %21 in 0 : vector<8x224xf32>, vector<8x224xf32>, vector<8x224xf32>, vector<8x224xf32>, vector<8x224xf32>, vector<8x224xf32>, vector<8x224xf32>, vector<8x224xf32>, vector<8x224xf32> -> vector<72x224xf32>
    %cst_6 = arith.constant dense<0.000000e+00> : vector<8x224xf32>
    %23 = tpu.matmul %0, %22, %cst_6 {dimension_numbers = #tpu.dot_dimension_numbers<[1], [0], [0], [1], [0, 0, 1, 1], [], []>} : vector<8x72xf32>, vector<72x224xf32>, vector<8x224xf32> -> vector<8x224xf32>
    %cst_7 = arith.constant 0.000000e+00 : f32
    %24 = vector.shape_cast %10 : vector<1x224xi1> to vector<1x224xi1>
    %25 = vector.broadcast %24 : vector<1x224xi1> to vector<8x224xi1>
    %26 = vector.broadcast %cst_7 : f32 to vector<8x224xf32>
    %27 = arith.select %25, %23, %26 : vector<8x224xi1>, vector<8x224xf32>
    %cst_8 = arith.constant dense<0.000000e+00> : vector<8xf32>
    %28 = vector.multi_reduction <add>, %27, %cst_8 [1] : vector<8x224xf32> to vector<8xf32>
    %29 = vector.shape_cast %28 : vector<8xf32> to vector<8x1xf32>
    %30 = arith.mulf %23, %23 : vector<8x224xf32>
    %cst_9 = arith.constant 0.000000e+00 : f32
    %31 = vector.shape_cast %10 : vector<1x224xi1> to vector<1x224xi1>
    %32 = vector.broadcast %31 : vector<1x224xi1> to vector<8x224xi1>
    %33 = vector.broadcast %cst_9 : f32 to vector<8x224xf32>
    %34 = arith.select %32, %30, %33 : vector<8x224xi1>, vector<8x224xf32>
    %cst_10 = arith.constant dense<0.000000e+00> : vector<8xf32>
    %35 = vector.multi_reduction <add>, %34, %cst_10 [1] : vector<8x224xf32> to vector<8xf32>
    %36 = vector.shape_cast %35 : vector<8xf32> to vector<8x1xf32>
    %c0_11 = arith.constant 0 : index
    %c0_12 = arith.constant 0 : index
    %c0_13 = arith.constant 0 : index
    %37 = vector.load %arg3[%c0_11, %c0_12, %c0_13] : memref<1x8x2xf32, #tpu.memory_space<vmem>>, vector<1x8x1xf32>
    %38 = vector.shape_cast %37 : vector<1x8x1xf32> to vector<8x1xf32>
    %39 = vector.shape_cast %29 : vector<8x1xf32> to vector<1x8x1xf32>
    tpu.vector_store %arg3[%c0_11, %c0_12, %c0_13], %39 {strides = array<i32>} : memref<1x8x2xf32, #tpu.memory_space<vmem>>, vector<1x8x1xf32>,
    %c0_14 = arith.constant 0 : index
    %c0_15 = arith.constant 0 : index
    %c1 = arith.constant 1 : index
    %40 = vector.load %arg3[%c0_14, %c0_15, %c1] : memref<1x8x2xf32, #tpu.memory_space<vmem>>, vector<1x8x1xf32>
    %41 = vector.shape_cast %40 : vector<1x8x1xf32> to vector<8x1xf32>
    %42 = vector.shape_cast %36 : vector<8x1xf32> to vector<1x8x1xf32>
    tpu.vector_store %arg3[%c0_14, %c0_15, %c1], %42 {strides = array<i32>} : memref<1x8x2xf32, #tpu.memory_space<vmem>>, vector<1x8x1xf32>,
    return
  }
  func.func @transform_0(%arg0: i32) -> (i32, i32, i32) {
    %c0_i32 = arith.constant 0 : i32
    %c0_i32_0 = arith.constant 0 : i32
    %c0_i32_1 = arith.constant 0 : i32
    return %arg0, %c0_i32, %c0_i32_0 : i32, i32, i32
  }
  func.func @transform_1(%arg0: i32) -> (i32, i32) {
    %c0_i32 = arith.constant 0 : i32
    %c0_i32_0 = arith.constant 0 : i32
    %c0_i32_1 = arith.constant 0 : i32
    return %c0_i32, %c0_i32_0 : i32, i32
  }
  func.func @transform_2(%arg0: i32) -> (i32, i32, i32) {
    %c0_i32 = arith.constant 0 : i32
    %c0_i32_0 = arith.constant 0 : i32
    %c0_i32_1 = arith.constant 0 : i32
    return %arg0, %c0_i32, %c0_i32_0 : i32, i32, i32
  }
}

module attributes {stable_mosaic.version = 11 : i64} {
  func.func @_apply_stats_kernel(%arg0: i32, %arg1: memref<1x8x384xf32, #tpu.memory_space<vmem>>, %arg2: memref<8x72xf32, #tpu.memory_space<vmem>>, %arg3: memref<8x1xf32, #tpu.memory_space<vmem>>, %arg4: memref<8x1xf32, #tpu.memory_space<vmem>>, %arg5: memref<8x72xf32, #tpu.memory_space<vmem>>, %arg6: memref<1x8x256xf32, #tpu.memory_space<vmem>>, %arg7: memref<1x8x2xf32, #tpu.memory_space<vmem>>) attributes {dimension_semantics = [#tpu.dimension_semantics<parallel>], iteration_bounds = array<i64: 2>, scalar_prefetch = 0 : i64, scratch_operands = 0 : i64, tpu.core_type = #tpu.core_type<tc>, window_params = [{transform_indices = @transform_0, window_bounds = array<i64: 1, 8, 384>}, {pipeline_mode = #tpu.pipeline_mode<synchronous>, transform_indices = @transform_1, window_bounds = array<i64: 8, 72>}, {pipeline_mode = #tpu.pipeline_mode<synchronous>, transform_indices = @transform_2, window_bounds = array<i64: 8, 1>}, {pipeline_mode = #tpu.pipeline_mode<synchronous>, transform_indices = @transform_3, window_bounds = array<i64: 8, 1>}, {pipeline_mode = #tpu.pipeline_mode<synchronous>, transform_indices = @transform_4, window_bounds = array<i64: 8, 72>}, {transform_indices = @transform_5, window_bounds = array<i64: 1, 8, 256>}, {transform_indices = @transform_6, window_bounds = array<i64: 1, 8, 2>}]} {
    %c0 = arith.constant 0 : index
    %c0_0 = arith.constant 0 : index
    %0 = vector.load %arg2[%c0, %c0_0] : memref<8x72xf32, #tpu.memory_space<vmem>>, vector<8x72xf32>
    %c0_1 = arith.constant 0 : index
    %c0_2 = arith.constant 0 : index
    %1 = vector.load %arg5[%c0_1, %c0_2] : memref<8x72xf32, #tpu.memory_space<vmem>>, vector<8x72xf32>
    %c0_3 = arith.constant 0 : index
    %c0_4 = arith.constant 0 : index
    %2 = vector.load %arg3[%c0_3, %c0_4] : memref<8x1xf32, #tpu.memory_space<vmem>>, vector<8x1xf32>
    %c0_5 = arith.constant 0 : index
    %c0_6 = arith.constant 0 : index
    %3 = vector.load %arg4[%c0_5, %c0_6] : memref<8x1xf32, #tpu.memory_space<vmem>>, vector<8x1xf32>
    %4 = tpu.iota {dimensions = array<i32: 1>} : vector<1x192xi32>
    %5 = arith.sitofp %4 : vector<1x192xi32> to vector<1x192xf32>
    %cst = arith.constant 1.600000e+01 : f32
    %6 = vector.broadcast %cst : f32 to vector<1x192xf32>
    %7 = arith.divf %5, %6 : vector<1x192xf32>
    %8 = math.floor %7 : vector<1x192xf32>
    %cst_7 = arith.constant 1.600000e+01 : f32
    %9 = vector.broadcast %cst_7 : f32 to vector<1x192xf32>
    %10 = arith.mulf %8, %9 : vector<1x192xf32>
    %11 = arith.subf %5, %10 : vector<1x192xf32>
    %cst_8 = arith.constant 1.150000e+01 : f32
    %12 = vector.broadcast %cst_8 : f32 to vector<1x192xf32>
    %13 = arith.cmpf olt, %11, %12 : vector<1x192xf32>
    %c0_9 = arith.constant 0 : index
    %c0_10 = arith.constant 0 : index
    %c0_11 = arith.constant 0 : index
    %14 = vector.load %arg1[%c0_9, %c0_10, %c0_11] : memref<1x8x384xf32, #tpu.memory_space<vmem>>, vector<1x8x384xf32>
    %15 = vector.shape_cast %14 : vector<1x8x384xf32> to vector<8x384xf32>
    %16 = vector.extract_strided_slice %15 {offsets = [0, 0], sizes = [8, 224], strides = [1, 1]} : vector<8x384xf32> to vector<8x224xf32>
    %17 = vector.extract_strided_slice %15 {offsets = [0, 1], sizes = [8, 224], strides = [1, 1]} : vector<8x384xf32> to vector<8x224xf32>
    %18 = vector.extract_strided_slice %15 {offsets = [0, 2], sizes = [8, 224], strides = [1, 1]} : vector<8x384xf32> to vector<8x224xf32>
    %19 = vector.extract_strided_slice %15 {offsets = [0, 16], sizes = [8, 224], strides = [1, 1]} : vector<8x384xf32> to vector<8x224xf32>
    %20 = vector.extract_strided_slice %15 {offsets = [0, 17], sizes = [8, 224], strides = [1, 1]} : vector<8x384xf32> to vector<8x224xf32>
    %21 = vector.extract_strided_slice %15 {offsets = [0, 18], sizes = [8, 224], strides = [1, 1]} : vector<8x384xf32> to vector<8x224xf32>
    %22 = vector.extract_strided_slice %15 {offsets = [0, 32], sizes = [8, 224], strides = [1, 1]} : vector<8x384xf32> to vector<8x224xf32>
    %23 = vector.extract_strided_slice %15 {offsets = [0, 33], sizes = [8, 224], strides = [1, 1]} : vector<8x384xf32> to vector<8x224xf32>
    %24 = vector.extract_strided_slice %15 {offsets = [0, 34], sizes = [8, 224], strides = [1, 1]} : vector<8x384xf32> to vector<8x224xf32>
    %25 = tpu.concatenate %16, %17, %18, %19, %20, %21, %22, %23, %24 in 0 : vector<8x224xf32>, vector<8x224xf32>, vector<8x224xf32>, vector<8x224xf32>, vector<8x224xf32>, vector<8x224xf32>, vector<8x224xf32>, vector<8x224xf32>, vector<8x224xf32> -> vector<72x224xf32>
    %cst_12 = arith.constant dense<0.000000e+00> : vector<8x224xf32>
    %26 = tpu.matmul %0, %25, %cst_12 {dimension_numbers = #tpu.dot_dimension_numbers<[1], [0], [0], [1], [0, 0, 1, 1], [], []>} : vector<8x72xf32>, vector<72x224xf32>, vector<8x224xf32> -> vector<8x224xf32>
    %27 = vector.broadcast %2 : vector<8x1xf32> to vector<8x224xf32>
    %28 = arith.mulf %26, %27 : vector<8x224xf32>
    %29 = vector.broadcast %3 : vector<8x1xf32> to vector<8x224xf32>
    %30 = arith.addf %28, %29 : vector<8x224xf32>
    %cst_13 = arith.constant 5.000000e-01 : f32
    %31 = vector.broadcast %cst_13 : f32 to vector<8x224xf32>
    %32 = arith.mulf %31, %30 : vector<8x224xf32>
    %cst_14 = arith.constant 0.707106769 : f32
    %33 = vector.broadcast %cst_14 : f32 to vector<8x224xf32>
    %34 = arith.mulf %30, %33 : vector<8x224xf32>
    %cst_15 = arith.constant 0.000000e+00 : f32
    %35 = vector.broadcast %cst_15 : f32 to vector<8x224xf32>
    %36 = arith.cmpf oge, %34, %35 : vector<8x224xf32>
    %cst_16 = arith.constant 1.000000e+00 : f32
    %cst_17 = arith.constant -1.000000e+00 : f32
    %37 = vector.broadcast %cst_16 : f32 to vector<8x224xf32>
    %38 = vector.broadcast %cst_17 : f32 to vector<8x224xf32>
    %39 = arith.select %36, %37, %38 : vector<8x224xi1>, vector<8x224xf32>
    %40 = math.absf %34 : vector<8x224xf32>
    %cst_18 = arith.constant 0.327591091 : f32
    %41 = vector.broadcast %cst_18 : f32 to vector<8x224xf32>
    %42 = arith.mulf %41, %40 : vector<8x224xf32>
    %cst_19 = arith.constant 1.000000e+00 : f32
    %43 = vector.broadcast %cst_19 : f32 to vector<8x224xf32>
    %44 = arith.addf %43, %42 : vector<8x224xf32>
    %cst_20 = arith.constant 1.000000e+00 : f32
    %45 = vector.broadcast %cst_20 : f32 to vector<8x224xf32>
    %46 = arith.divf %45, %44 : vector<8x224xf32>
    %cst_21 = arith.constant 1.06140542 : f32
    %47 = vector.broadcast %cst_21 : f32 to vector<8x224xf32>
    %48 = arith.mulf %46, %47 : vector<8x224xf32>
    %cst_22 = arith.constant -1.45315206 : f32
    %49 = vector.broadcast %cst_22 : f32 to vector<8x224xf32>
    %50 = arith.addf %49, %48 : vector<8x224xf32>
    %51 = arith.mulf %46, %50 : vector<8x224xf32>
    %cst_23 = arith.constant 1.42141378 : f32
    %52 = vector.broadcast %cst_23 : f32 to vector<8x224xf32>
    %53 = arith.addf %52, %51 : vector<8x224xf32>
    %54 = arith.mulf %46, %53 : vector<8x224xf32>
    %cst_24 = arith.constant -0.284496725 : f32
    %55 = vector.broadcast %cst_24 : f32 to vector<8x224xf32>
    %56 = arith.addf %55, %54 : vector<8x224xf32>
    %57 = arith.mulf %46, %56 : vector<8x224xf32>
    %cst_25 = arith.constant 0.254829586 : f32
    %58 = vector.broadcast %cst_25 : f32 to vector<8x224xf32>
    %59 = arith.addf %58, %57 : vector<8x224xf32>
    %60 = arith.mulf %46, %59 : vector<8x224xf32>
    %cst_26 = arith.constant 0.000000e+00 : f32
    %61 = vector.broadcast %cst_26 : f32 to vector<8x224xf32>
    %62 = arith.subf %61, %40 : vector<8x224xf32>
    %63 = arith.mulf %62, %40 : vector<8x224xf32>
    %64 = math.exp %63 : vector<8x224xf32>
    %65 = arith.mulf %60, %64 : vector<8x224xf32>
    %cst_27 = arith.constant 1.000000e+00 : f32
    %66 = vector.broadcast %cst_27 : f32 to vector<8x224xf32>
    %67 = arith.subf %66, %65 : vector<8x224xf32>
    %68 = arith.mulf %39, %67 : vector<8x224xf32>
    %cst_28 = arith.constant 1.000000e+00 : f32
    %69 = vector.broadcast %cst_28 : f32 to vector<8x224xf32>
    %70 = arith.addf %69, %68 : vector<8x224xf32>
    %71 = arith.mulf %32, %70 : vector<8x224xf32>
    %cst_29 = arith.constant 0.000000e+00 : f32
    %72 = vector.broadcast %cst_29 : f32 to vector<8x32xf32>
    %73 = tpu.concatenate %71, %72 in 1 : vector<8x224xf32>, vector<8x32xf32> -> vector<8x256xf32>
    %c0_30 = arith.constant 0 : index
    %c0_31 = arith.constant 0 : index
    %c0_32 = arith.constant 0 : index
    %74 = vector.load %arg6[%c0_30, %c0_31, %c0_32] : memref<1x8x256xf32, #tpu.memory_space<vmem>>, vector<1x8x256xf32>
    %75 = vector.shape_cast %74 : vector<1x8x256xf32> to vector<8x256xf32>
    %76 = vector.shape_cast %73 : vector<8x256xf32> to vector<1x8x256xf32>
    tpu.vector_store %arg6[%c0_30, %c0_31, %c0_32], %76 {strides = array<i32>} : memref<1x8x256xf32, #tpu.memory_space<vmem>>, vector<1x8x256xf32>,
    %77 = vector.extract_strided_slice %73 {offsets = [0, 0], sizes = [8, 192], strides = [1, 1]} : vector<8x256xf32> to vector<8x192xf32>
    %78 = vector.extract_strided_slice %73 {offsets = [0, 1], sizes = [8, 192], strides = [1, 1]} : vector<8x256xf32> to vector<8x192xf32>
    %79 = vector.extract_strided_slice %73 {offsets = [0, 2], sizes = [8, 192], strides = [1, 1]} : vector<8x256xf32> to vector<8x192xf32>
    %80 = vector.extract_strided_slice %73 {offsets = [0, 16], sizes = [8, 192], strides = [1, 1]} : vector<8x256xf32> to vector<8x192xf32>
    %81 = vector.extract_strided_slice %73 {offsets = [0, 17], sizes = [8, 192], strides = [1, 1]} : vector<8x256xf32> to vector<8x192xf32>
    %82 = vector.extract_strided_slice %73 {offsets = [0, 18], sizes = [8, 192], strides = [1, 1]} : vector<8x256xf32> to vector<8x192xf32>
    %83 = vector.extract_strided_slice %73 {offsets = [0, 32], sizes = [8, 192], strides = [1, 1]} : vector<8x256xf32> to vector<8x192xf32>
    %84 = vector.extract_strided_slice %73 {offsets = [0, 33], sizes = [8, 192], strides = [1, 1]} : vector<8x256xf32> to vector<8x192xf32>
    %85 = vector.extract_strided_slice %73 {offsets = [0, 34], sizes = [8, 192], strides = [1, 1]} : vector<8x256xf32> to vector<8x192xf32>
    %86 = tpu.concatenate %77, %78, %79, %80, %81, %82, %83, %84, %85 in 0 : vector<8x192xf32>, vector<8x192xf32>, vector<8x192xf32>, vector<8x192xf32>, vector<8x192xf32>, vector<8x192xf32>, vector<8x192xf32>, vector<8x192xf32>, vector<8x192xf32> -> vector<72x192xf32>
    %cst_33 = arith.constant dense<0.000000e+00> : vector<8x192xf32>
    %87 = tpu.matmul %1, %86, %cst_33 {dimension_numbers = #tpu.dot_dimension_numbers<[1], [0], [0], [1], [0, 0, 1, 1], [], []>} : vector<8x72xf32>, vector<72x192xf32>, vector<8x192xf32> -> vector<8x192xf32>
    %cst_34 = arith.constant 0.000000e+00 : f32
    %88 = vector.shape_cast %13 : vector<1x192xi1> to vector<1x192xi1>
    %89 = vector.broadcast %88 : vector<1x192xi1> to vector<8x192xi1>
    %90 = vector.broadcast %cst_34 : f32 to vector<8x192xf32>
    %91 = arith.select %89, %87, %90 : vector<8x192xi1>, vector<8x192xf32>
    %cst_35 = arith.constant dense<0.000000e+00> : vector<8xf32>
    %92 = vector.multi_reduction <add>, %91, %cst_35 [1] : vector<8x192xf32> to vector<8xf32>
    %93 = vector.shape_cast %92 : vector<8xf32> to vector<8x1xf32>
    %94 = arith.mulf %87, %87 : vector<8x192xf32>
    %cst_36 = arith.constant 0.000000e+00 : f32
    %95 = vector.shape_cast %13 : vector<1x192xi1> to vector<1x192xi1>
    %96 = vector.broadcast %95 : vector<1x192xi1> to vector<8x192xi1>
    %97 = vector.broadcast %cst_36 : f32 to vector<8x192xf32>
    %98 = arith.select %96, %94, %97 : vector<8x192xi1>, vector<8x192xf32>
    %cst_37 = arith.constant dense<0.000000e+00> : vector<8xf32>
    %99 = vector.multi_reduction <add>, %98, %cst_37 [1] : vector<8x192xf32> to vector<8xf32>
    %100 = vector.shape_cast %99 : vector<8xf32> to vector<8x1xf32>
    %c0_38 = arith.constant 0 : index
    %c0_39 = arith.constant 0 : index
    %c0_40 = arith.constant 0 : index
    %101 = vector.load %arg7[%c0_38, %c0_39, %c0_40] : memref<1x8x2xf32, #tpu.memory_space<vmem>>, vector<1x8x1xf32>
    %102 = vector.shape_cast %101 : vector<1x8x1xf32> to vector<8x1xf32>
    %103 = vector.shape_cast %93 : vector<8x1xf32> to vector<1x8x1xf32>
    tpu.vector_store %arg7[%c0_38, %c0_39, %c0_40], %103 {strides = array<i32>} : memref<1x8x2xf32, #tpu.memory_space<vmem>>, vector<1x8x1xf32>,
    %c0_41 = arith.constant 0 : index
    %c0_42 = arith.constant 0 : index
    %c1 = arith.constant 1 : index
    %104 = vector.load %arg7[%c0_41, %c0_42, %c1] : memref<1x8x2xf32, #tpu.memory_space<vmem>>, vector<1x8x1xf32>
    %105 = vector.shape_cast %104 : vector<1x8x1xf32> to vector<8x1xf32>
    %106 = vector.shape_cast %100 : vector<8x1xf32> to vector<1x8x1xf32>
    tpu.vector_store %arg7[%c0_41, %c0_42, %c1], %106 {strides = array<i32>} : memref<1x8x2xf32, #tpu.memory_space<vmem>>, vector<1x8x1xf32>,
    return
  }
  func.func @transform_0(%arg0: i32) -> (i32, i32, i32) {
    %c0_i32 = arith.constant 0 : i32
    %c0_i32_0 = arith.constant 0 : i32
    %c0_i32_1 = arith.constant 0 : i32
    return %arg0, %c0_i32, %c0_i32_0 : i32, i32, i32
  }
  func.func @transform_1(%arg0: i32) -> (i32, i32) {
    %c0_i32 = arith.constant 0 : i32
    %c0_i32_0 = arith.constant 0 : i32
    %c0_i32_1 = arith.constant 0 : i32
    return %c0_i32, %c0_i32_0 : i32, i32
  }
  func.func @transform_2(%arg0: i32) -> (i32, i32) {
    %c0_i32 = arith.constant 0 : i32
    %c0_i32_0 = arith.constant 0 : i32
    %c0_i32_1 = arith.constant 0 : i32
    return %c0_i32, %c0_i32_0 : i32, i32
  }
  func.func @transform_3(%arg0: i32) -> (i32, i32) {
    %c0_i32 = arith.constant 0 : i32
    %c0_i32_0 = arith.constant 0 : i32
    %c0_i32_1 = arith.constant 0 : i32
    return %c0_i32, %c0_i32_0 : i32, i32
  }
  func.func @transform_4(%arg0: i32) -> (i32, i32) {
    %c0_i32 = arith.constant 0 : i32
    %c0_i32_0 = arith.constant 0 : i32
    %c0_i32_1 = arith.constant 0 : i32
    return %c0_i32, %c0_i32_0 : i32, i32
  }
  func.func @transform_5(%arg0: i32) -> (i32, i32, i32) {
    %c0_i32 = arith.constant 0 : i32
    %c0_i32_0 = arith.constant 0 : i32
    %c0_i32_1 = arith.constant 0 : i32
    return %arg0, %c0_i32, %c0_i32_0 : i32, i32, i32
  }
  func.func @transform_6(%arg0: i32) -> (i32, i32, i32) {
    %c0_i32 = arith.constant 0 : i32
    %c0_i32_0 = arith.constant 0 : i32
    %c0_i32_1 = arith.constant 0 : i32
    return %arg0, %c0_i32, %c0_i32_0 : i32, i32, i32
  }
}

module attributes {stable_mosaic.version = 11 : i64} {
  func.func @_apply_kernel(%arg0: i32, %arg1: memref<1x8x256xf32, #tpu.memory_space<vmem>>, %arg2: memref<8x72xf32, #tpu.memory_space<vmem>>, %arg3: memref<8x1xf32, #tpu.memory_space<vmem>>, %arg4: memref<8x1xf32, #tpu.memory_space<vmem>>, %arg5: memref<1x8x256xf32, #tpu.memory_space<vmem>>) attributes {dimension_semantics = [#tpu.dimension_semantics<parallel>], iteration_bounds = array<i64: 2>, scalar_prefetch = 0 : i64, scratch_operands = 0 : i64, tpu.core_type = #tpu.core_type<tc>, window_params = [{transform_indices = @transform_0, window_bounds = array<i64: 1, 8, 256>}, {pipeline_mode = #tpu.pipeline_mode<synchronous>, transform_indices = @transform_1, window_bounds = array<i64: 8, 72>}, {pipeline_mode = #tpu.pipeline_mode<synchronous>, transform_indices = @transform_2, window_bounds = array<i64: 8, 1>}, {pipeline_mode = #tpu.pipeline_mode<synchronous>, transform_indices = @transform_3, window_bounds = array<i64: 8, 1>}, {transform_indices = @transform_4, window_bounds = array<i64: 1, 8, 256>}]} {
    %c0 = arith.constant 0 : index
    %c0_0 = arith.constant 0 : index
    %0 = vector.load %arg2[%c0, %c0_0] : memref<8x72xf32, #tpu.memory_space<vmem>>, vector<8x72xf32>
    %c0_1 = arith.constant 0 : index
    %c0_2 = arith.constant 0 : index
    %1 = vector.load %arg3[%c0_1, %c0_2] : memref<8x1xf32, #tpu.memory_space<vmem>>, vector<8x1xf32>
    %c0_3 = arith.constant 0 : index
    %c0_4 = arith.constant 0 : index
    %2 = vector.load %arg4[%c0_3, %c0_4] : memref<8x1xf32, #tpu.memory_space<vmem>>, vector<8x1xf32>
    %c0_5 = arith.constant 0 : index
    %c0_6 = arith.constant 0 : index
    %c0_7 = arith.constant 0 : index
    %3 = vector.load %arg1[%c0_5, %c0_6, %c0_7] : memref<1x8x256xf32, #tpu.memory_space<vmem>>, vector<1x8x256xf32>
    %4 = vector.shape_cast %3 : vector<1x8x256xf32> to vector<8x256xf32>
    %5 = vector.extract_strided_slice %4 {offsets = [0, 0], sizes = [8, 192], strides = [1, 1]} : vector<8x256xf32> to vector<8x192xf32>
    %6 = vector.extract_strided_slice %4 {offsets = [0, 1], sizes = [8, 192], strides = [1, 1]} : vector<8x256xf32> to vector<8x192xf32>
    %7 = vector.extract_strided_slice %4 {offsets = [0, 2], sizes = [8, 192], strides = [1, 1]} : vector<8x256xf32> to vector<8x192xf32>
    %8 = vector.extract_strided_slice %4 {offsets = [0, 16], sizes = [8, 192], strides = [1, 1]} : vector<8x256xf32> to vector<8x192xf32>
    %9 = vector.extract_strided_slice %4 {offsets = [0, 17], sizes = [8, 192], strides = [1, 1]} : vector<8x256xf32> to vector<8x192xf32>
    %10 = vector.extract_strided_slice %4 {offsets = [0, 18], sizes = [8, 192], strides = [1, 1]} : vector<8x256xf32> to vector<8x192xf32>
    %11 = vector.extract_strided_slice %4 {offsets = [0, 32], sizes = [8, 192], strides = [1, 1]} : vector<8x256xf32> to vector<8x192xf32>
    %12 = vector.extract_strided_slice %4 {offsets = [0, 33], sizes = [8, 192], strides = [1, 1]} : vector<8x256xf32> to vector<8x192xf32>
    %13 = vector.extract_strided_slice %4 {offsets = [0, 34], sizes = [8, 192], strides = [1, 1]} : vector<8x256xf32> to vector<8x192xf32>
    %14 = tpu.concatenate %5, %6, %7, %8, %9, %10, %11, %12, %13 in 0 : vector<8x192xf32>, vector<8x192xf32>, vector<8x192xf32>, vector<8x192xf32>, vector<8x192xf32>, vector<8x192xf32>, vector<8x192xf32>, vector<8x192xf32>, vector<8x192xf32> -> vector<72x192xf32>
    %cst = arith.constant dense<0.000000e+00> : vector<8x192xf32>
    %15 = tpu.matmul %0, %14, %cst {dimension_numbers = #tpu.dot_dimension_numbers<[1], [0], [0], [1], [0, 0, 1, 1], [], []>} : vector<8x72xf32>, vector<72x192xf32>, vector<8x192xf32> -> vector<8x192xf32>
    %16 = vector.broadcast %1 : vector<8x1xf32> to vector<8x192xf32>
    %17 = arith.mulf %15, %16 : vector<8x192xf32>
    %18 = vector.broadcast %2 : vector<8x1xf32> to vector<8x192xf32>
    %19 = arith.addf %17, %18 : vector<8x192xf32>
    %cst_8 = arith.constant 5.000000e-01 : f32
    %20 = vector.broadcast %cst_8 : f32 to vector<8x192xf32>
    %21 = arith.mulf %20, %19 : vector<8x192xf32>
    %cst_9 = arith.constant 0.707106769 : f32
    %22 = vector.broadcast %cst_9 : f32 to vector<8x192xf32>
    %23 = arith.mulf %19, %22 : vector<8x192xf32>
    %cst_10 = arith.constant 0.000000e+00 : f32
    %24 = vector.broadcast %cst_10 : f32 to vector<8x192xf32>
    %25 = arith.cmpf oge, %23, %24 : vector<8x192xf32>
    %cst_11 = arith.constant 1.000000e+00 : f32
    %cst_12 = arith.constant -1.000000e+00 : f32
    %26 = vector.broadcast %cst_11 : f32 to vector<8x192xf32>
    %27 = vector.broadcast %cst_12 : f32 to vector<8x192xf32>
    %28 = arith.select %25, %26, %27 : vector<8x192xi1>, vector<8x192xf32>
    %29 = math.absf %23 : vector<8x192xf32>
    %cst_13 = arith.constant 0.327591091 : f32
    %30 = vector.broadcast %cst_13 : f32 to vector<8x192xf32>
    %31 = arith.mulf %30, %29 : vector<8x192xf32>
    %cst_14 = arith.constant 1.000000e+00 : f32
    %32 = vector.broadcast %cst_14 : f32 to vector<8x192xf32>
    %33 = arith.addf %32, %31 : vector<8x192xf32>
    %cst_15 = arith.constant 1.000000e+00 : f32
    %34 = vector.broadcast %cst_15 : f32 to vector<8x192xf32>
    %35 = arith.divf %34, %33 : vector<8x192xf32>
    %cst_16 = arith.constant 1.06140542 : f32
    %36 = vector.broadcast %cst_16 : f32 to vector<8x192xf32>
    %37 = arith.mulf %35, %36 : vector<8x192xf32>
    %cst_17 = arith.constant -1.45315206 : f32
    %38 = vector.broadcast %cst_17 : f32 to vector<8x192xf32>
    %39 = arith.addf %38, %37 : vector<8x192xf32>
    %40 = arith.mulf %35, %39 : vector<8x192xf32>
    %cst_18 = arith.constant 1.42141378 : f32
    %41 = vector.broadcast %cst_18 : f32 to vector<8x192xf32>
    %42 = arith.addf %41, %40 : vector<8x192xf32>
    %43 = arith.mulf %35, %42 : vector<8x192xf32>
    %cst_19 = arith.constant -0.284496725 : f32
    %44 = vector.broadcast %cst_19 : f32 to vector<8x192xf32>
    %45 = arith.addf %44, %43 : vector<8x192xf32>
    %46 = arith.mulf %35, %45 : vector<8x192xf32>
    %cst_20 = arith.constant 0.254829586 : f32
    %47 = vector.broadcast %cst_20 : f32 to vector<8x192xf32>
    %48 = arith.addf %47, %46 : vector<8x192xf32>
    %49 = arith.mulf %35, %48 : vector<8x192xf32>
    %cst_21 = arith.constant 0.000000e+00 : f32
    %50 = vector.broadcast %cst_21 : f32 to vector<8x192xf32>
    %51 = arith.subf %50, %29 : vector<8x192xf32>
    %52 = arith.mulf %51, %29 : vector<8x192xf32>
    %53 = math.exp %52 : vector<8x192xf32>
    %54 = arith.mulf %49, %53 : vector<8x192xf32>
    %cst_22 = arith.constant 1.000000e+00 : f32
    %55 = vector.broadcast %cst_22 : f32 to vector<8x192xf32>
    %56 = arith.subf %55, %54 : vector<8x192xf32>
    %57 = arith.mulf %28, %56 : vector<8x192xf32>
    %cst_23 = arith.constant 1.000000e+00 : f32
    %58 = vector.broadcast %cst_23 : f32 to vector<8x192xf32>
    %59 = arith.addf %58, %57 : vector<8x192xf32>
    %60 = arith.mulf %21, %59 : vector<8x192xf32>
    %cst_24 = arith.constant 0.000000e+00 : f32
    %61 = vector.broadcast %cst_24 : f32 to vector<8x64xf32>
    %62 = tpu.concatenate %60, %61 in 1 : vector<8x192xf32>, vector<8x64xf32> -> vector<8x256xf32>
    %c0_25 = arith.constant 0 : index
    %c0_26 = arith.constant 0 : index
    %c0_27 = arith.constant 0 : index
    %63 = vector.load %arg5[%c0_25, %c0_26, %c0_27] : memref<1x8x256xf32, #tpu.memory_space<vmem>>, vector<1x8x256xf32>
    %64 = vector.shape_cast %63 : vector<1x8x256xf32> to vector<8x256xf32>
    %65 = vector.shape_cast %62 : vector<8x256xf32> to vector<1x8x256xf32>
    tpu.vector_store %arg5[%c0_25, %c0_26, %c0_27], %65 {strides = array<i32>} : memref<1x8x256xf32, #tpu.memory_space<vmem>>, vector<1x8x256xf32>,
    return
  }
  func.func @transform_0(%arg0: i32) -> (i32, i32, i32) {
    %c0_i32 = arith.constant 0 : i32
    %c0_i32_0 = arith.constant 0 : i32
    %c0_i32_1 = arith.constant 0 : i32
    return %arg0, %c0_i32, %c0_i32_0 : i32, i32, i32
  }
  func.func @transform_1(%arg0: i32) -> (i32, i32) {
    %c0_i32 = arith.constant 0 : i32
    %c0_i32_0 = arith.constant 0 : i32
    %c0_i32_1 = arith.constant 0 : i32
    return %c0_i32, %c0_i32_0 : i32, i32
  }
  func.func @transform_2(%arg0: i32) -> (i32, i32) {
    %c0_i32 = arith.constant 0 : i32
    %c0_i32_0 = arith.constant 0 : i32
    %c0_i32_1 = arith.constant 0 : i32
    return %c0_i32, %c0_i32_0 : i32, i32
  }
  func.func @transform_3(%arg0: i32) -> (i32, i32) {
    %c0_i32 = arith.constant 0 : i32
    %c0_i32_0 = arith.constant 0 : i32
    %c0_i32_1 = arith.constant 0 : i32
    return %c0_i32, %c0_i32_0 : i32, i32
  }
  func.func @transform_4(%arg0: i32) -> (i32, i32, i32) {
    %c0_i32 = arith.constant 0 : i32
    %c0_i32_0 = arith.constant 0 : i32
    %c0_i32_1 = arith.constant 0 : i32
    return %arg0, %c0_i32, %c0_i32_0 : i32, i32, i32
  }
}

</mosaic_0001>

<bundles_post_ra>
// kernel: conv_block_multi.3
= control target key start
LH: loop header
LB: loop body
LE: loop exit
PB: predicated region body
PF: predicated region fallthrough
CT: control target
= control target key end

     0   :  { %s445_s9 = smov 0   ;;  %s494_s0 = inlined_call_operand.vmem [shape: f32[2,8,384], index: 0, kind: input, shape index: {}]   ;;  %s495_s1 = inlined_call_operand.vmem [shape: f32[8,72], index: 1, kind: input, shape index: {}]   ;;  %s496_s2 = inlined_call_operand.vmem [shape: f32[2,8,2], index: 2, kind: output, shape index: {}]  }
   0x1 LB: > { %s385_s10 = sadd.s32 4294967295, %s419_s9   ;;  %p389_p0 = scmp.ge.s32.totalorder %s419_s9, 1  ;;  %s419_s9 = sphi %s445_s9, %s12_s9  }
   0x2   : > { %p112_p1 = scmp.lt.s32.totalorder %s419_s9, 3 }
   0x4   : > { %p113_p2 = pnand %p389_p0, %p112_p1 }
   0x5   : > { %p133_p3 = scmp.lt.s32.totalorder (!%p113_p2), %s385_s10, 1  ;;  %s421_s15 = smov (!%p113_p2), 94  }
   0x6   : > { %116 = sbr.rel (%p113_p2) target bundleno = 507 (0x1fb), region = 28  ;;  %s422_s16 = smov (!%p113_p2), 95  }
   0x7   : > { %s423_s17 = smov (!%p113_p2), 96   ;;  %s424_s18 = smov (!%p113_p2), 110  }
   0x8   : > { %s425_s19 = smov (!%p113_p2), 111   ;;  %s427_s20 = smov (!%p113_p2), 112  }
   0x9   : > { %s428_s21 = smov (!%p113_p2), 126   ;;  %s429_s22 = smov (!%p113_p2), 127  }
   0xb   : > { %s498_s10 = smov (!%p133_p3, %s385_s10), 1  ;;  %v426_v3 = vmov 0.0   ;;  %vm230_vm0 = vcmask 769024   ;;  %vm219_vm1 = vcmask 777216   ;;  %vm208_vm2 = vcmask 785408   ;;  %v142_v32 = vld [vmem:[%s495_s1] sm:$0xff] }
   0xc   : > { %s395_s11 = smul.u32 24, %s498_s10  ;;  %303 = vmatprep.mubr.f32.mxu0 %v426_v3  ;;  %vm200_vm3 = vcmask 900096   ;;  %vm192_vm4 = vcmask 908288   ;;  %vm184_vm5 = vcmask 916480   ;;  %vm176_vm6 = vcmask 1031168   ;;  %s391_s25 = sshll.u32 %s498_s10, 3 }
   0xd   : > { %vm168_vm7 = vcmask 1039360   ;;  %vm235_vm8 = vcmask 588800   ;;  %v143_v33 = vlaneseq  ;;  %s141_s28 = scalar_lea.vmem %s496_s2, %s391_s25  ;;  %vm328_vm11 = vcmask 7168  }
   0xe   : > { %s137_s14 = scalar_lea.vmem %s494_s0, %s395_s11  ;;  %vm330_vm12 = vcmask 15368  }
   0xf   : > { %v459_v0 = vld [vmem:[%s137_s14 + $0x8] sm:$0xff]  ;;  %v461_v1 = vld [vmem:[%s137_s14] sm:$0xff]  ;;  %v161_v2 = vld [vmem:[%s137_s14 + $0x10] sm:$0xff]  ;;  %v144_v34 = vand.u32 127, %v143_v33 }
  0x10   : > { %226 = vrot.lane.b32.xlu0 %v459_v0, %s421_s15  ;;  %224 = vrot.lane.b32.xlu1 %v461_v1, %s421_s15 }
  0x11   : > { %v145_v35 = vadd.s32 128, %v144_v34  ;;  %v146_v37 = vcvt.s32.f32 %v144_v34 }
  0x13   : > { %v147_v36 = vcvt.s32.f32 %v145_v35  ;;  %v149_v39 = vmul.f32 0.0625, %v146_v37 }
  0x14   : > { %228 = vrot.lane.b32.xlu0 %v161_v2, %s421_s15  ;;  %215 = vrot.lane.b32.xlu1 %v459_v0, %s422_s16 }
  0x15   : > { %v150_v38 = vmul.f32 0.0625, %v147_v36  ;;  %v151_v41 = vfloor.f32 %v149_v39 }
  0x17   : > { %v152_v40 = vfloor.f32 %v150_v38  ;;  %v153_v43 = vmul.f32 16.0, %v151_v41 }
  0x18   : > { %217 = vrot.lane.b32.xlu0 %v161_v2, %s422_s16  ;;  %213 = vrot.lane.b32.xlu1 %v461_v1, %s422_s16 }
  0x19   : > { %v154_v42 = vmul.f32 16.0, %v152_v40  ;;  %v155_v45 = vsub.f32 %v146_v37, %v153_v43 }
  0x1b   : > { %v156_v44 = vsub.f32 %v147_v36, %v154_v42  ;;  %vm157_vm10 = vcmp.lt.f32.partialorder %v155_v45, 13.5 }
  0x1c   : > { %204 = vrot.lane.b32.xlu0 %v461_v1, %s423_s17  ;;  %206 = vrot.lane.b32.xlu1 %v459_v0, %s423_s17 }
  0x1d   : > { %vm158_vm9 = vcmp.lt.f32.partialorder %v156_v44, 13.5 }
  0x20   : > { %196 = vrot.lane.b32.xlu0 %v461_v1, %s424_s18  ;;  %198 = vrot.lane.b32.xlu1 %v459_v0, %s424_s18 }
  0x24   : > { %188 = vrot.lane.b32.xlu0 %v461_v1, %s425_s19  ;;  %190 = vrot.lane.b32.xlu1 %v459_v0, %s425_s19 }
  0x28   : > { %180 = vrot.lane.b32.xlu0 %v461_v1, %s427_s20  ;;  %182 = vrot.lane.b32.xlu1 %v459_v0, %s427_s20 }
  0x2c   : > { %172 = vrot.lane.b32.xlu0 %v461_v1, %s428_s21  ;;  %174 = vrot.lane.b32.xlu1 %v459_v0, %s428_s21 }
  0x30   : > { %164 = vrot.lane.b32.xlu0 %v461_v1, %s429_s22  ;;  %166 = vrot.lane.b32.xlu1 %v459_v0, %s429_s22 }
  0x82   : > { %v227_v4 = vpop.permute.xlu0 %226  ;;  %v225_v5 = vpop.permute.xlu1 %224 }
  0x83   : > { %v231_v9 = vsel %vm230_vm0, %v225_v5, %v227_v4 }
  0x86   : > { %v229_v6 = vpop.permute.xlu0 %228  ;;  %v216_v7 = vpop.permute.xlu1 %215 }
  0x87   : > { %v232_v8 = vsel %vm230_vm0, %v227_v4, %v229_v6 }
  0x88   : > { %253 = vmatprep.subr.mxu0 %v232_v8 }
  0x89   : > { %254 = vmatpush1.msra.mxu0 %v231_v9 }
  0x8a   : > { %v218_v10 = vpop.permute.xlu0 %217  ;;  %v214_v11 = vpop.permute.xlu1 %213 }
  0x8b   : > { %v221_v12 = vsel %vm219_vm1, %v216_v7, %v218_v10  ;;  %v220_v13 = vsel %vm219_vm1, %v214_v11, %v216_v7 }
  0x8c   : > { %255 = vmatprep.subr.mxu0 %v221_v12 }
  0x8d   : > { %256 = vmatpush1.msra.mxu0 %v220_v13 }
  0x8e   : > { %v205_v14 = vpop.permute.xlu0 %204  ;;  %v207_v15 = vpop.permute.xlu1 %206 }
  0x8f   : > { %257 = vmatprep.subr.mxu0 %v207_v15  ;;  %v209_v16 = vsel %vm208_vm2, %v205_v14, %v207_v15 }
  0x90   : > { %258 = vmatpush1.msra.mxu0 %v209_v16 }
  0x92   : > { %v197_v17 = vpop.permute.xlu0 %196  ;;  %v199_v18 = vpop.permute.xlu1 %198 }
  0x93   : > { %259 = vmatprep.subr.mxu0 %v199_v18  ;;  %v201_v19 = vsel %vm200_vm3, %v197_v17, %v199_v18 }
  0x94   : > { %260 = vmatpush1.msra.mxu0 %v201_v19 }
  0x96   : > { %v189_v20 = vpop.permute.xlu0 %188  ;;  %v191_v21 = vpop.permute.xlu1 %190 }
  0x97   : > { %261 = vmatprep.subr.mxu0 %v191_v21  ;;  %v193_v22 = vsel %vm192_vm4, %v189_v20, %v191_v21 }
  0x98   : > { %262 = vmatpush1.msra.mxu0 %v193_v22 }
  0x9a   : > { %v181_v23 = vpop.permute.xlu0 %180  ;;  %v183_v24 = vpop.permute.xlu1 %182 }
  0x9b   : > { %263 = vmatprep.subr.mxu0 %v183_v24  ;;  %v185_v25 = vsel %vm184_vm5, %v181_v23, %v183_v24 }
  0x9c   : > { %264 = vmatpush1.msra.mxu0 %v185_v25 }
  0x9e   : > { %v173_v26 = vpop.permute.xlu0 %172  ;;  %v175_v27 = vpop.permute.xlu1 %174 }
  0x9f   : > { %265 = vmatprep.subr.mxu0 %v175_v27  ;;  %v177_v28 = vsel %vm176_vm6, %v173_v26, %v175_v27 }
  0xa0   : > { %266 = vmatpush1.msra.mxu0 %v177_v28 }
  0xa2   : > { %v165_v29 = vpop.permute.xlu0 %164  ;;  %v167_v30 = vpop.permute.xlu1 %166 }
  0xa3   : > { %267 = vmatprep.subr.mxu0 %v167_v30  ;;  %v169_v31 = vsel %vm168_vm7, %v165_v29, %v167_v30 }
  0xa4   : > { %268 = vmatpush1.msra.mxu0 %v169_v31 }
  0xa5   : > { %269 = vmatprep.subr.mxu0 %v459_v0 }
  0xa6   : > { %270 = vmatpush1.msra.mxu0 %v461_v1 }
  0xa7   : > { %392 = vmatmul.mubr.msk.f32.vlgmr.msra.gmra.mxu0 %vm235_vm8, %v142_v32 }
 0x167   : > { %v305_v46 = vpop.f32.mrf.mxu0 }
 0x168   : > { %v320_v47 = vmul.f32 %v305_v46, %v305_v46  ;;  %v314_v51 = vsel %vm157_vm10, %v305_v46, 0.0 }
 0x169   : > { %v307_v48 = vpop.f32.mrf.mxu0 }
 0x16a   : > { %v315_v49 = vsel %vm158_vm9, %v307_v48, 0.0  ;;  %v321_v50 = vmul.f32 %v307_v48, %v307_v48  ;;  %v322_v55 = vsel %vm157_vm10, %v320_v47, 0.0 }
 0x16b   : > { %v316_v52 = vsel %vm208_vm2, %v315_v49, 0.0 }
 0x16c   : > { %v323_v53 = vsel %vm158_vm9, %v321_v50, 0.0  ;;  %v317_v54 = vadd.f32 %v316_v52, %v314_v51 }
 0x16d   : > { %v324_v56 = vsel %vm208_vm2, %v323_v53, 0.0 }
 0x16e   : > { %318 = vadd.xlane.f32.xlu0 %v317_v54  ;;  %v325_v57 = vadd.f32 %v324_v56, %v322_v55 }
 0x170   : > { %326 = vadd.xlane.f32.xlu1 %v325_v57 }
 0x1f7   : > { %v319_v58 = vpop.xlane.xlu0 %318 }
 0x1f8   : > { %329 = vst.msk [vmem:[%s141_s28] sm:$0xff] %vm328_vm11, %v319_v58 }
 0x1f9   : > { %v327_v59 = vpop.xlane.xlu1 %326 }
 0x1fa   : > { %331 = vst.msk [vmem:[%s141_s28] sm:$0xff] %vm330_vm12, %v327_v59 }
 0x1fb PF: > { %s12_s9 = sadd.s32 1, %s419_s9  }
 0x1fc   : > { %p9_p4 = scmp.ge.s32.totalorder %s12_s9, 4  }
 0x1fe   :  { %11 = sbr.rel (!%p9_p4) target bundleno = 1 (0x1), region = 58 }

// kernel: conv_block_multi.5
= control target key start
LH: loop header
LB: loop body
LE: loop exit
PB: predicated region body
PF: predicated region fallthrough
CT: control target
= control target key end

     0   :  { %s558_s15 = smov 0   ;;  %s613_s0 = inlined_call_operand.vmem [shape: f32[2,8,256], index: 0, kind: input, shape index: {}]   ;;  %s614_s1 = inlined_call_operand.vmem [shape: f32[8,72], index: 1, kind: input, shape index: {}]   ;;  %s615_s2 = inlined_call_operand.vmem [shape: f32[8,1], index: 2, kind: input, shape index: {}]   ;;  %s616_s3 = inlined_call_operand.vmem [shape: f32[8,1], index: 3, kind: input, shape index: {}]   ;;  %s617_s4 = inlined_call_operand.vmem [shape: f32[2,8,256], index: 4, kind: output, shape index: {}]  }
   0x1 LB: > { %s471_s16 = sadd.s32 4294967295, %s520_s15   ;;  %p475_p0 = scmp.ge.s32.totalorder %s520_s15, 1  ;;  %s520_s15 = sphi %s558_s15, %s14_s15  }
   0x2   : > { %p162_p1 = scmp.lt.s32.totalorder %s520_s15, 3 }
   0x4   : > { %p163_p2 = pnand %p475_p0, %p162_p1 }
   0x5   : > { %p188_p3 = scmp.lt.s32.totalorder (!%p163_p2), %s471_s16, 1  ;;  %s522_s21 = smov (!%p163_p2), 95  }
   0x6   : > { %166 = sbr.rel (%p163_p2) target bundleno = 413 (0x19d), region = 36  ;;  %s523_s22 = smov (!%p163_p2), 94  }
   0x7   : > { %s524_s23 = smov (!%p163_p2), 96   ;;  %s525_s24 = smov (!%p163_p2), 110  }
   0x8   : > { %s526_s25 = smov (!%p163_p2), 111   ;;  %s528_s26 = smov (!%p163_p2), 112  }
   0x9   : > { %s530_s27 = smov (!%p163_p2), 126   ;;  %s531_s28 = smov (!%p163_p2), 127  }
   0xb   : > { %s619_s16 = smov (!%p188_p3, %s471_s16), 1  ;;  %v527_v2 = vmov 0.0   ;;  %v529_v3 = vmov 0   ;;  %v199_v4 = vld [vmem:[%s615_s2] sm:$0xff]  ;;  %vm265_vm0 = vcmask 769024   ;;  %vm257_vm1 = vcmask 777216  }
   0xc   : > { %s483_s17 = sshll.u32 %s619_s16, 4  ;;  %337 = vmatprep.mubr.f32.mxu0 %v527_v2  ;;  %504 = vset.pattern.permute.xlu0 %v529_v3  ;;  %v200_v5 = vld [vmem:[%s616_s3] sm:$0xff]  ;;  %vm249_vm2 = vcmask 785408   ;;  %vm241_vm3 = vcmask 900096   ;;  %vm233_vm4 = vcmask 908288   ;;  %vm225_vm5 = vcmask 916480  }
   0xd   : > { %s192_s20 = scalar_lea.vmem %s613_s0, %s483_s17  ;;  %505 = vset.pattern.permute.xlu1 %v529_v3  ;;  %vm217_vm6 = vcmask 1031168   ;;  %vm209_vm7 = vcmask 1039360   ;;  %v198_v30 = vld [vmem:[%s614_s1] sm:$0xff]  ;;  %vm269_vm8 = vcmask 588800   ;;  %s197_s11 = scalar_lea.vmem %s617_s4, %s483_s17  ;;  %vm412_vm11 = vcmask 523264  }
   0xe   : > { %v574_v0 = vld [vmem:[%s192_s20] sm:$0xff]  ;;  %v578_v1 = vld [vmem:[%s192_s20 + $0x8] sm:$0xff] }
   0xf   : > { %253 = vrot.lane.b32.xlu1 %v574_v0, %s522_s21  ;;  %261 = vrot.lane.b32.xlu0 %v574_v0, %s523_s22 }
  0x13   : > { %255 = vrot.lane.b32.xlu1 %v578_v1, %s522_s21  ;;  %263 = vrot.lane.b32.xlu0 %v578_v1, %s523_s22 }
  0x17   : > { %247 = vrot.lane.b32.xlu1 %v578_v1, %s524_s23  ;;  %245 = vrot.lane.b32.xlu0 %v574_v0, %s524_s23 }
  0x1b   : > { %239 = vrot.lane.b32.xlu1 %v578_v1, %s525_s24  ;;  %237 = vrot.lane.b32.xlu0 %v574_v0, %s525_s24 }
  0x1f   : > { %231 = vrot.lane.b32.xlu1 %v578_v1, %s526_s25  ;;  %229 = vrot.lane.b32.xlu0 %v574_v0, %s526_s25 }
  0x23   : > { %223 = vrot.lane.b32.xlu1 %v578_v1, %s528_s26  ;;  %221 = vrot.lane.b32.xlu0 %v574_v0, %s528_s26 }
  0x27   : > { %215 = vrot.lane.b32.xlu1 %v578_v1, %s530_s27  ;;  %213 = vrot.lane.b32.xlu0 %v574_v0, %s530_s27 }
  0x2b   : > { %207 = vrot.lane.b32.xlu1 %v578_v1, %s531_s28  ;;  %205 = vrot.lane.b32.xlu0 %v574_v0, %s531_s28 }
  0x2f   : > { %346 = vperm.xlu0 %504, %v199_v4   ;;  %353 = vperm.xlu1 %505, %v200_v5  }
  0x81   : > { %v254_v6 = vpop.permute.xlu1 %253  ;;  %v262_v7 = vpop.permute.xlu0 %261 }
  0x85   : > { %v256_v8 = vpop.permute.xlu1 %255  ;;  %v264_v9 = vpop.permute.xlu0 %263 }
  0x86   : > { %287 = vmatprep.subr.mxu0 %v264_v9  ;;  %v266_v10 = vsel %vm265_vm0, %v262_v7, %v264_v9  ;;  %v258_v11 = vsel %vm257_vm1, %v254_v6, %v256_v8 }
  0x87   : > { %288 = vmatpush1.msra.mxu0 %v266_v10 }
  0x88   : > { %289 = vmatprep.subr.mxu0 %v256_v8 }
  0x89   : > { %v248_v12 = vpop.permute.xlu1 %247  ;;  %290 = vmatpush1.msra.mxu0 %v258_v11  ;;  %v246_v13 = vpop.permute.xlu0 %245 }
  0x8a   : > { %291 = vmatprep.subr.mxu0 %v248_v12  ;;  %v250_v14 = vsel %vm249_vm2, %v246_v13, %v248_v12  ;;  %v532_v13 = vmov -1.0  }
  0x8b   : > { %292 = vmatpush1.msra.mxu0 %v250_v14 }
  0x8d   : > { %v240_v15 = vpop.permute.xlu1 %239  ;;  %v238_v16 = vpop.permute.xlu0 %237 }
  0x8e   : > { %293 = vmatprep.subr.mxu0 %v240_v15  ;;  %v242_v17 = vsel %vm241_vm3, %v238_v16, %v240_v15 }
  0x8f   : > { %294 = vmatpush1.msra.mxu0 %v242_v17 }
  0x91   : > { %v232_v18 = vpop.permute.xlu1 %231  ;;  %v230_v19 = vpop.permute.xlu0 %229 }
  0x92   : > { %295 = vmatprep.subr.mxu0 %v232_v18  ;;  %v234_v20 = vsel %vm233_vm4, %v230_v19, %v232_v18 }
  0x93   : > { %296 = vmatpush1.msra.mxu0 %v234_v20 }
  0x95   : > { %v224_v21 = vpop.permute.xlu1 %223  ;;  %v222_v22 = vpop.permute.xlu0 %221 }
  0x96   : > { %297 = vmatprep.subr.mxu0 %v224_v21  ;;  %v226_v23 = vsel %vm225_vm5, %v222_v22, %v224_v21 }
  0x97   : > { %298 = vmatpush1.msra.mxu0 %v226_v23 }
  0x99   : > { %v216_v24 = vpop.permute.xlu1 %215  ;;  %v214_v25 = vpop.permute.xlu0 %213 }
  0x9a   : > { %299 = vmatprep.subr.mxu0 %v216_v24  ;;  %v218_v26 = vsel %vm217_vm6, %v214_v25, %v216_v24 }
  0x9b   : > { %300 = vmatpush1.msra.mxu0 %v218_v26 }
  0x9d   : > { %v208_v27 = vpop.permute.xlu1 %207  ;;  %v206_v28 = vpop.permute.xlu0 %205 }
  0x9e   : > { %301 = vmatprep.subr.mxu0 %v208_v27  ;;  %v210_v29 = vsel %vm209_vm7, %v206_v28, %v208_v27 }
  0x9f   : > { %302 = vmatpush1.msra.mxu0 %v210_v29 }
  0xa0   : > { %303 = vmatprep.subr.mxu0 %v578_v1 }
  0xa1   : > { %304 = vmatpush1.msra.mxu0 %v574_v0 }
  0xa2   : > { %480 = vmatmul.mubr.msk.f32.vlgmr.msra.gmra.mxu0 %vm269_vm8, %v198_v30 }
  0xaa   : > { %v347_v31 = vpop.permute.xlu0 %346  ;;  %v354_v33 = vpop.permute.xlu1 %353 }
 0x162   : > { %v339_v32 = vpop.f32.mrf.mxu0 }
 0x163   : > { %v349_v34 = vmul.f32 %v347_v31, %v339_v32 }
 0x164   : > { %v341_v35 = vpop.f32.mrf.mxu0 }
 0x165   : > { %v356_v36 = vadd.f32 %v354_v33, %v349_v34  ;;  %v350_v37 = vmul.f32 %v347_v31, %v341_v35 }
 0x167   : > { %v360_v38 = vmul.f32 0.70710677, %v356_v36  ;;  %v357_v39 = vadd.f32 %v354_v33, %v350_v37  ;;  %v358_v18 = vmul.f32 0.5, %v356_v36 }
 0x169   : > { %v366_v40 = vand.u32 2147483647, %v360_v38  ;;  %v361_v41 = vmul.f32 0.70710677, %v357_v39  ;;  %vm362_vm9 = vcmp.ge.f32.partialorder %v360_v38, 0.0  ;;  %v359_v23 = vmul.f32 0.5, %v357_v39 }
 0x16a   : > { %v364_v14 = vsel %vm362_vm9, 1.0, %v532_v13 }
 0x16b   : > { %v368_v42 = vmul.f32 0.3275911, %v366_v40  ;;  %v367_v43 = vand.u32 2147483647, %v361_v41  ;;  %v394_v47 = vsub.f32 0.0, %v366_v40  ;;  %vm363_vm10 = vcmp.ge.f32.partialorder %v361_v41, 0.0 }
 0x16c   : > { %v365_v20 = vsel %vm363_vm10, 1.0, %v532_v13 }
 0x16d   : > { %v370_v44 = vadd.f32 1.0, %v368_v42  ;;  %v369_v45 = vmul.f32 0.3275911, %v367_v43  ;;  %v395_v48 = vsub.f32 0.0, %v367_v43  ;;  %v396_v49 = vmul.f32 %v394_v47, %v366_v40 }
 0x16f   : > { %506 = vrcp.f32 %v370_v44  ;;  %v371_v46 = vadd.f32 1.0, %v369_v45  ;;  %v397_v51 = vmul.f32 %v395_v48, %v367_v43  ;;  %v398_v53 = vmul.f32 1.442695, %v396_v49 }
 0x171   : > { %508 = vrcp.f32 %v371_v46  ;;  %v400_v57 = vmul.f32 1.442695, %v397_v51 }
 0x172   : > { %510 = vpow2.f32 %v398_v53 }
 0x173   : > { %512 = vpow2.f32 %v400_v57 }
 0x17c   : > { %v507_v50 = vpop.eup %506 }
 0x17d   : > { %v376_v52 = vmul.f32 1.0614054, %v507_v50 }
 0x17e   : > { %v509_v54 = vpop.eup %508 }
 0x17f   : > { %v378_v55 = vadd.f32 -1.4531521, %v376_v52  ;;  %v377_v56 = vmul.f32 1.0614054, %v509_v54  ;;  %v511_v7 = vpop.eup %510 }
 0x180   : > { %v513_v11 = vpop.eup %512 }
 0x181   : > { %v380_v58 = vmul.f32 %v507_v50, %v378_v55  ;;  %v379_v59 = vadd.f32 -1.4531521, %v377_v56 }
 0x183   : > { %v382_v60 = vadd.f32 1.4214138, %v380_v58  ;;  %v381_v61 = vmul.f32 %v509_v54, %v379_v59 }
 0x185   : > { %v384_v62 = vmul.f32 %v507_v50, %v382_v60  ;;  %v383_v63 = vadd.f32 1.4214138, %v381_v61 }
 0x187   : > { %v386_v0 = vadd.f32 -0.28449672, %v384_v62  ;;  %v385_v1 = vmul.f32 %v509_v54, %v383_v63 }
 0x189   : > { %v388_v2 = vmul.f32 %v507_v50, %v386_v0  ;;  %v387_v3 = vadd.f32 -0.28449672, %v385_v1 }
 0x18b   : > { %v390_v4 = vadd.f32 0.2548296, %v388_v2  ;;  %v389_v5 = vmul.f32 %v509_v54, %v387_v3 }
 0x18d   : > { %v392_v6 = vmul.f32 %v507_v50, %v390_v4  ;;  %v391_v8 = vadd.f32 0.2548296, %v389_v5 }
 0x18f   : > { %v402_v9 = vmul.f32 %v511_v7, %v392_v6  ;;  %v393_v10 = vmul.f32 %v509_v54, %v391_v8 }
 0x191   : > { %v404_v12 = vsub.f32 1.0, %v402_v9  ;;  %v403_v15 = vmul.f32 %v513_v11, %v393_v10 }
 0x193   : > { %v406_v16 = vmul.f32 %v404_v12, %v364_v14  ;;  %v405_v17 = vsub.f32 1.0, %v403_v15 }
 0x195   : > { %v408_v19 = vadd.f32 1.0, %v406_v16  ;;  %v407_v21 = vmul.f32 %v405_v17, %v365_v20 }
 0x197   : > { %v410_v22 = vmul.f32 %v408_v19, %v358_v18  ;;  %v409_v24 = vadd.f32 1.0, %v407_v21 }
 0x199   : > { %414 = vst [vmem:[%s197_s11] sm:$0xff] %v410_v22  ;;  %v411_v25 = vmul.f32 %v409_v24, %v359_v23 }
 0x19b   : > { %v413_v26 = vsel %vm412_vm11, %v411_v25, 0.0 }
 0x19c   : > { %415 = vst [vmem:[%s197_s11 + $0x8] sm:$0xff] %v413_v26 }
 0x19d PF: > { %s14_s15 = sadd.s32 1, %s520_s15  }
 0x19e   : > { %p11_p4 = scmp.ge.s32.totalorder %s14_s15, 4  }
 0x1a0   :  { %13 = sbr.rel (!%p11_p4) target bundleno = 1 (0x1), region = 66 }

// kernel: conv_block_multi.4
= control target key start
LH: loop header
LB: loop body
LE: loop exit
PB: predicated region body
PF: predicated region fallthrough
CT: control target
= control target key end

     0   :  { %s845_s21 = smov 0   ;;  %s972_s0 = inlined_call_operand.vmem [shape: f32[2,8,384], index: 0, kind: input, shape index: {}]   ;;  %s973_s1 = inlined_call_operand.vmem [shape: f32[8,72], index: 1, kind: input, shape index: {}]   ;;  %s974_s2 = inlined_call_operand.vmem [shape: f32[8,1], index: 2, kind: input, shape index: {}]   ;;  %s975_s3 = inlined_call_operand.vmem [shape: f32[8,1], index: 3, kind: input, shape index: {}]   ;;  %s976_s4 = inlined_call_operand.vmem [shape: f32[8,72], index: 4, kind: input, shape index: {}]   ;;  %s977_s5 = inlined_call_operand.vmem [shape: f32[2,8,256], index: 5, kind: output, shape index: {0}]   ;;  %s978_s6 = inlined_call_operand.vmem [shape: f32[2,8,2], index: 6, kind: output, shape index: {1}]  }
   0x1 LB: > { %s746_s22 = sadd.s32 4294967295, %s797_s21   ;;  %p750_p0 = scmp.ge.s32.totalorder %s797_s21, 1  ;;  %s797_s21 = sphi %s845_s21, %s17_s21  }
   0x2   : > { %p215_p1 = scmp.lt.s32.totalorder %s797_s21, 3 }
   0x4   : > { %p216_p2 = pnand %p750_p0, %p215_p1 }
   0x5   : > { %p249_p3 = scmp.lt.s32.totalorder (!%p216_p2), %s746_s22, 1  ;;  %s799_s27 = smov (!%p216_p2), 94  }
   0x6   : > { %219 = sbr.rel (%p216_p2) target bundleno = 904 (0x388), region = 40  ;;  %s800_s28 = smov (!%p216_p2), 95  }
   0x7   : > { %s801_s29 = smov (!%p216_p2), 96   ;;  %s802_s30 = smov (!%p216_p2), 110  }
   0x8   : > { %s803_s7 = smov (!%p216_p2), 111   ;;  %s805_s8 = smov (!%p216_p2), 112  }
   0x9   : > { %s807_s9 = smov (!%p216_p2), 126   ;;  %s808_s10 = smov (!%p216_p2), 127  }
   0xb   : > { %s980_s22 = smov (!%p249_p3, %s746_s22), 1  ;;  %v804_v3 = vmov 0.0   ;;  %v806_v4 = vmov 0   ;;  %v265_v5 = vld [vmem:[%s974_s2] sm:$0xff]  ;;  %vm354_vm0 = vcmask 769024   ;;  %vm343_vm1 = vcmask 777216  }
   0xc   : > { %s761_s23 = smul.u32 24, %s980_s22  ;;  %427 = vmatprep.mubr.f32.mxu0 %v804_v3  ;;  %630 = vmatprep.mubr.f32.mxu1 %v804_v3  ;;  %v266_v6 = vld [vmem:[%s975_s3] sm:$0xff]  ;;  %vm332_vm2 = vcmask 785408   ;;  %vm324_vm3 = vcmask 900096   ;;  %vm316_vm4 = vcmask 908288   ;;  %vm308_vm5 = vcmask 916480  }
   0xd   : > { %781 = vset.pattern.permute.xlu0 %v806_v4  ;;  %782 = vset.pattern.permute.xlu1 %v806_v4  ;;  %vm300_vm6 = vcmask 1031168   ;;  %vm292_vm7 = vcmask 1039360   ;;  %v263_v35 = vld [vmem:[%s973_s1] sm:$0xff]  ;;  %vm359_vm8 = vcmask 588800   ;;  %s760_s17 = sshll.u32 %s980_s22, 4  ;;  %vm643_vm13 = vcmask 523264  }
   0xe   : > { %s253_s26 = scalar_lea.vmem %s972_s0, %s761_s23  ;;  %s258_s20 = scalar_lea.vmem %s977_s5, %s760_s17  ;;  %vm656_vm14 = vcmask 7168   ;;  %vm658_vm15 = vcmask 15368  }
   0xf   : > { %v859_v0 = vld [vmem:[%s253_s26 + $0x8] sm:$0xff]  ;;  %v861_v1 = vld [vmem:[%s253_s26] sm:$0xff]  ;;  %v285_v2 = vld [vmem:[%s253_s26 + $0x10] sm:$0xff]  ;;  %s754_s25 = sshll.u32 %s980_s22, 3 }
  0x10   : > { %350 = vrot.lane.b32.xlu0 %v859_v0, %s799_s27  ;;  %348 = vrot.lane.b32.xlu1 %v861_v1, %s799_s27 }
  0x14   : > { %352 = vrot.lane.b32.xlu0 %v285_v2, %s799_s27  ;;  %339 = vrot.lane.b32.xlu1 %v859_v0, %s800_s28 }
  0x18   : > { %341 = vrot.lane.b32.xlu0 %v285_v2, %s800_s28  ;;  %337 = vrot.lane.b32.xlu1 %v861_v1, %s800_s28 }
  0x1c   : > { %328 = vrot.lane.b32.xlu0 %v861_v1, %s801_s29  ;;  %330 = vrot.lane.b32.xlu1 %v859_v0, %s801_s29 }
  0x20   : > { %320 = vrot.lane.b32.xlu0 %v861_v1, %s802_s30  ;;  %322 = vrot.lane.b32.xlu1 %v859_v0, %s802_s30 }
  0x24   : > { %312 = vrot.lane.b32.xlu0 %v861_v1, %s803_s7  ;;  %314 = vrot.lane.b32.xlu1 %v859_v0, %s803_s7 }
  0x28   : > { %304 = vrot.lane.b32.xlu0 %v861_v1, %s805_s8  ;;  %306 = vrot.lane.b32.xlu1 %v859_v0, %s805_s8 }
  0x2c   : > { %296 = vrot.lane.b32.xlu0 %v861_v1, %s807_s9  ;;  %298 = vrot.lane.b32.xlu1 %v859_v0, %s807_s9 }
  0x30   : > { %288 = vrot.lane.b32.xlu0 %v861_v1, %s808_s10  ;;  %290 = vrot.lane.b32.xlu1 %v859_v0, %s808_s10 }
  0x34   : > { %436 = vperm.xlu0 %781, %v265_v5   ;;  %443 = vperm.xlu1 %782, %v266_v6  }
  0x82   : > { %v351_v7 = vpop.permute.xlu0 %350  ;;  %v349_v8 = vpop.permute.xlu1 %348 }
  0x83   : > { %v355_v12 = vsel %vm354_vm0, %v349_v8, %v351_v7 }
  0x86   : > { %v353_v9 = vpop.permute.xlu0 %352  ;;  %v340_v10 = vpop.permute.xlu1 %339 }
  0x87   : > { %v356_v11 = vsel %vm354_vm0, %v351_v7, %v353_v9 }
  0x88   : > { %377 = vmatprep.subr.mxu0 %v356_v11 }
  0x89   : > { %378 = vmatpush1.msra.mxu0 %v355_v12 }
  0x8a   : > { %v342_v13 = vpop.permute.xlu0 %341  ;;  %v338_v14 = vpop.permute.xlu1 %337 }
  0x8b   : > { %v345_v15 = vsel %vm343_vm1, %v340_v10, %v342_v13  ;;  %v344_v16 = vsel %vm343_vm1, %v338_v14, %v340_v10 }
  0x8c   : > { %379 = vmatprep.subr.mxu0 %v345_v15 }
  0x8d   : > { %380 = vmatpush1.msra.mxu0 %v344_v16 }
  0x8e   : > { %v329_v17 = vpop.permute.xlu0 %328  ;;  %v331_v18 = vpop.permute.xlu1 %330 }
  0x8f   : > { %381 = vmatprep.subr.mxu0 %v331_v18  ;;  %v333_v19 = vsel %vm332_vm2, %v329_v17, %v331_v18 }
  0x90   : > { %382 = vmatpush1.msra.mxu0 %v333_v19  ;;  %v809_v19 = vmov -1.0  }
  0x92   : > { %v321_v20 = vpop.permute.xlu0 %320  ;;  %v323_v21 = vpop.permute.xlu1 %322 }
  0x93   : > { %383 = vmatprep.subr.mxu0 %v323_v21  ;;  %v325_v22 = vsel %vm324_vm3, %v321_v20, %v323_v21 }
  0x94   : > { %384 = vmatpush1.msra.mxu0 %v325_v22 }
  0x96   : > { %v313_v23 = vpop.permute.xlu0 %312  ;;  %v315_v24 = vpop.permute.xlu1 %314 }
  0x97   : > { %385 = vmatprep.subr.mxu0 %v315_v24  ;;  %v317_v25 = vsel %vm316_vm4, %v313_v23, %v315_v24 }
  0x98   : > { %386 = vmatpush1.msra.mxu0 %v317_v25 }
  0x9a   : > { %v305_v26 = vpop.permute.xlu0 %304  ;;  %v307_v27 = vpop.permute.xlu1 %306 }
  0x9b   : > { %387 = vmatprep.subr.mxu0 %v307_v27  ;;  %v309_v28 = vsel %vm308_vm5, %v305_v26, %v307_v27 }
  0x9c   : > { %388 = vmatpush1.msra.mxu0 %v309_v28 }
  0x9e   : > { %v297_v29 = vpop.permute.xlu0 %296  ;;  %v299_v30 = vpop.permute.xlu1 %298 }
  0x9f   : > { %389 = vmatprep.subr.mxu0 %v299_v30  ;;  %v301_v31 = vsel %vm300_vm6, %v297_v29, %v299_v30 }
  0xa0   : > { %390 = vmatpush1.msra.mxu0 %v301_v31 }
  0xa2   : > { %v289_v32 = vpop.permute.xlu0 %288  ;;  %v291_v33 = vpop.permute.xlu1 %290 }
  0xa3   : > { %391 = vmatprep.subr.mxu0 %v291_v33  ;;  %v293_v34 = vsel %vm292_vm7, %v289_v32, %v291_v33 }
  0xa4   : > { %392 = vmatpush1.msra.mxu0 %v293_v34 }
  0xa5   : > { %393 = vmatprep.subr.mxu0 %v859_v0 }
  0xa6   : > { %394 = vmatpush1.msra.mxu0 %v861_v1 }
  0xa7   : > { %755 = vmatmul.mubr.msk.f32.vlgmr.msra.gmra.mxu0 %vm359_vm8, %v263_v35 }
  0xaf   : > { %v437_v36 = vpop.permute.xlu0 %436  ;;  %v444_v38 = vpop.permute.xlu1 %443 }
 0x167   : > { %v429_v37 = vpop.f32.mrf.mxu0 }
 0x168   : > { %v439_v39 = vmul.f32 %v437_v36, %v429_v37 }
 0x169   : > { %v431_v40 = vpop.f32.mrf.mxu0 }
 0x16a   : > { %v440_v41 = vmul.f32 %v437_v36, %v431_v40  ;;  %v446_v42 = vadd.f32 %v444_v38, %v439_v39 }
 0x16c   : > { %v447_v43 = vadd.f32 %v444_v38, %v440_v41  ;;  %v450_v44 = vmul.f32 0.70710677, %v446_v42  ;;  %v448_v24 = vmul.f32 0.5, %v446_v42 }
 0x16e   : > { %v451_v45 = vmul.f32 0.70710677, %v447_v43  ;;  %v456_v46 = vand.u32 2147483647, %v450_v44  ;;  %vm452_vm9 = vcmp.ge.f32.partialorder %v450_v44, 0.0  ;;  %v449_v27 = vmul.f32 0.5, %v447_v43 }
 0x16f   : > { %v454_v20 = vsel %vm452_vm9, 1.0, %v809_v19 }
 0x170   : > { %v457_v47 = vand.u32 2147483647, %v451_v45  ;;  %v458_v48 = vmul.f32 0.3275911, %v456_v46  ;;  %v484_v52 = vsub.f32 0.0, %v456_v46  ;;  %vm453_vm10 = vcmp.ge.f32.partialorder %v451_v45, 0.0 }
 0x171   : > { %v455_v23 = vsel %vm453_vm10, 1.0, %v809_v19 }
 0x172   : > { %v459_v49 = vmul.f32 0.3275911, %v457_v47  ;;  %v460_v50 = vadd.f32 1.0, %v458_v48  ;;  %v485_v53 = vsub.f32 0.0, %v457_v47  ;;  %v486_v54 = vmul.f32 %v484_v52, %v456_v46 }
 0x174   : > { %v461_v51 = vadd.f32 1.0, %v459_v49  ;;  %783 = vrcp.f32 %v460_v50  ;;  %v487_v55 = vmul.f32 %v485_v53, %v457_v47  ;;  %v488_v58 = vmul.f32 1.442695, %v486_v54 }
 0x176   : > { %785 = vrcp.f32 %v461_v51  ;;  %v490_v62 = vmul.f32 1.442695, %v487_v55 }
 0x177   : > { %787 = vpow2.f32 %v488_v58 }
 0x178   : > { %789 = vpow2.f32 %v490_v62 }
 0x181   : > { %v784_v56 = vpop.eup %783 }
 0x182   : > { %v466_v57 = vmul.f32 1.0614054, %v784_v56 }
 0x183   : > { %v786_v59 = vpop.eup %785 }
 0x184   : > { %v467_v60 = vmul.f32 1.0614054, %v786_v59  ;;  %v468_v61 = vadd.f32 -1.4531521, %v466_v57  ;;  %v788_v13 = vpop.eup %787  ;;  %v267_v57 = vlaneseq }
 0x185   : > { %v790_v16 = vpop.eup %789 }
 0x186   : > { %v469_v63 = vadd.f32 -1.4531521, %v467_v60  ;;  %v470_v0 = vmul.f32 %v784_v56, %v468_v61  ;;  %v268_v58 = vand.u32 127, %v267_v57 }
 0x188   : > { %v471_v1 = vmul.f32 %v786_v59, %v469_v63  ;;  %v472_v2 = vadd.f32 1.4214138, %v470_v0  ;;  %v270_v61 = vcvt.s32.f32 %v268_v58 }
 0x18a   : > { %v473_v3 = vadd.f32 1.4214138, %v471_v1  ;;  %v474_v4 = vmul.f32 %v784_v56, %v472_v2  ;;  %v273_v63 = vmul.f32 0.0625, %v270_v61 }
 0x18c   : > { %v475_v5 = vmul.f32 %v786_v59, %v473_v3  ;;  %v476_v6 = vadd.f32 -0.28449672, %v474_v4  ;;  %v275_v1 = vfloor.f32 %v273_v63 }
 0x18e   : > { %v477_v7 = vadd.f32 -0.28449672, %v475_v5  ;;  %v478_v8 = vmul.f32 %v784_v56, %v476_v6  ;;  %v277_v3 = vmul.f32 16.0, %v275_v1 }
 0x190   : > { %v479_v9 = vmul.f32 %v786_v59, %v477_v7  ;;  %v480_v10 = vadd.f32 0.2548296, %v478_v8  ;;  %v279_v5 = vsub.f32 %v270_v61, %v277_v3 }
 0x192   : > { %v481_v11 = vadd.f32 0.2548296, %v479_v9  ;;  %v482_v12 = vmul.f32 %v784_v56, %v480_v10  ;;  %v264_v56 = vld [vmem:[%s976_s4] sm:$0xff]  ;;  %vm281_vm12 = vcmp.lt.f32.partialorder %v279_v5, 11.5 }
 0x194   : > { %v483_v14 = vmul.f32 %v786_v59, %v481_v11  ;;  %v492_v15 = vmul.f32 %v788_v13, %v482_v12  ;;  %v269_v59 = vadd.s32 128, %v268_v58 }
 0x196   : > { %v493_v17 = vmul.f32 %v790_v16, %v483_v14  ;;  %v494_v18 = vsub.f32 1.0, %v492_v15  ;;  %v271_v60 = vcvt.s32.f32 %v269_v59 }
 0x198   : > { %v495_v21 = vsub.f32 1.0, %v493_v17  ;;  %v496_v22 = vmul.f32 %v494_v18, %v454_v20  ;;  %v274_v62 = vmul.f32 0.0625, %v271_v60 }
 0x19a   : > { %v497_v25 = vmul.f32 %v495_v21, %v455_v23  ;;  %v498_v26 = vadd.f32 1.0, %v496_v22  ;;  %v276_v0 = vfloor.f32 %v274_v62 }
 0x19c   : > { %v499_v28 = vadd.f32 1.0, %v497_v25  ;;  %v923_v29 = vmul.f32 %v498_v26, %v448_v24  ;;  %v278_v2 = vmul.f32 16.0, %v276_v0 }
 0x19e   : > { %v501_v30 = vmul.f32 %v499_v28, %v449_v27  ;;  %503 = vst [vmem:[%s258_s20] sm:$0xff] %v923_v29  ;;  %556 = vrot.lane.b32.xlu1 %v923_v29, %s799_s27  ;;  %v280_v4 = vsub.f32 %v271_v60, %v278_v2 }
 0x1a0   : > { %v502_v31 = vsel %vm332_vm2, %v501_v30, 0.0  ;;  %vm282_vm11 = vcmp.lt.f32.partialorder %v280_v4, 11.5 }
 0x1a1   : > { %504 = vst [vmem:[%s258_s20 + $0x8] sm:$0xff] %v502_v31  ;;  %558 = vrot.lane.b32.xlu0 %v502_v31, %s799_s27 }
 0x1a2   : > { %549 = vrot.lane.b32.xlu1 %v923_v29, %s800_s28 }
 0x1a5   : > { %551 = vrot.lane.b32.xlu0 %v502_v31, %s800_s28  ;;  %s262_s28 = scalar_lea.vmem %s978_s6, %s754_s25 }
 0x1a6   : > { %542 = vrot.lane.b32.xlu1 %v923_v29, %s801_s29 }
 0x1a9   : > { %544 = vrot.lane.b32.xlu0 %v502_v31, %s801_s29 }
 0x1aa   : > { %535 = vrot.lane.b32.xlu1 %v923_v29, %s802_s30 }
 0x1ad   : > { %537 = vrot.lane.b32.xlu0 %v502_v31, %s802_s30 }
 0x1ae   : > { %528 = vrot.lane.b32.xlu1 %v923_v29, %s803_s7 }
 0x1b1   : > { %530 = vrot.lane.b32.xlu0 %v502_v31, %s803_s7 }
 0x1b2   : > { %521 = vrot.lane.b32.xlu1 %v923_v29, %s805_s8 }
 0x1b5   : > { %523 = vrot.lane.b32.xlu0 %v502_v31, %s805_s8 }
 0x1b6   : > { %514 = vrot.lane.b32.xlu1 %v923_v29, %s807_s9 }
 0x1b9   : > { %516 = vrot.lane.b32.xlu0 %v502_v31, %s807_s9 }
 0x1ba   : > { %507 = vrot.lane.b32.xlu1 %v923_v29, %s808_s10 }
 0x1bd   : > { %509 = vrot.lane.b32.xlu0 %v502_v31, %s808_s10 }
 0x210   : > { %v557_v32 = vpop.permute.xlu1 %556 }
 0x213   : > { %v559_v33 = vpop.permute.xlu0 %558 }
 0x214   : > { %580 = vmatprep.subr.mxu1 %v559_v33  ;;  %v550_v34 = vpop.permute.xlu1 %549  ;;  %v560_v35 = vsel %vm354_vm0, %v557_v32, %v559_v33 }
 0x215   : > { %581 = vmatpush1.msra.mxu1 %v560_v35 }
 0x217   : > { %v552_v36 = vpop.permute.xlu0 %551 }
 0x218   : > { %582 = vmatprep.subr.mxu1 %v552_v36  ;;  %v543_v37 = vpop.permute.xlu1 %542  ;;  %v553_v38 = vsel %vm343_vm1, %v550_v34, %v552_v36 }
 0x219   : > { %583 = vmatpush1.msra.mxu1 %v553_v38 }
 0x21b   : > { %v545_v39 = vpop.permute.xlu0 %544 }
 0x21c   : > { %584 = vmatprep.subr.mxu1 %v545_v39  ;;  %v536_v40 = vpop.permute.xlu1 %535  ;;  %v546_v41 = vsel %vm332_vm2, %v543_v37, %v545_v39 }
 0x21d   : > { %585 = vmatpush1.msra.mxu1 %v546_v41 }
 0x21f   : > { %v538_v42 = vpop.permute.xlu0 %537 }
 0x220   : > { %586 = vmatprep.subr.mxu1 %v538_v42  ;;  %v529_v43 = vpop.permute.xlu1 %528  ;;  %v539_v44 = vsel %vm324_vm3, %v536_v40, %v538_v42 }
 0x221   : > { %587 = vmatpush1.msra.mxu1 %v539_v44 }
 0x223   : > { %v531_v45 = vpop.permute.xlu0 %530 }
 0x224   : > { %588 = vmatprep.subr.mxu1 %v531_v45  ;;  %v522_v46 = vpop.permute.xlu1 %521  ;;  %v532_v47 = vsel %vm316_vm4, %v529_v43, %v531_v45 }
 0x225   : > { %589 = vmatpush1.msra.mxu1 %v532_v47 }
 0x227   : > { %v524_v48 = vpop.permute.xlu0 %523 }
 0x228   : > { %590 = vmatprep.subr.mxu1 %v524_v48  ;;  %v525_v49 = vsel %vm308_vm5, %v522_v46, %v524_v48  ;;  %v515_v50 = vpop.permute.xlu1 %514 }
 0x229   : > { %591 = vmatpush1.msra.mxu1 %v525_v49 }
 0x22b   : > { %v517_v51 = vpop.permute.xlu0 %516 }
 0x22c   : > { %592 = vmatprep.subr.mxu1 %v517_v51  ;;  %v518_v52 = vsel %vm300_vm6, %v515_v50, %v517_v51  ;;  %v508_v53 = vpop.permute.xlu1 %507 }
 0x22d   : > { %593 = vmatpush1.msra.mxu1 %v518_v52 }
 0x22f   : > { %v510_v54 = vpop.permute.xlu0 %509 }
 0x230   : > { %594 = vmatprep.subr.mxu1 %v510_v54  ;;  %v511_v55 = vsel %vm292_vm7, %v508_v53, %v510_v54 }
 0x231   : > { %595 = vmatpush1.msra.mxu1 %v511_v55 }
 0x232   : > { %756 = vmatprep.subr.msk.mxu1 %vm332_vm2, %v501_v30 }
 0x233   : > { %597 = vmatpush1.msra.mxu1 %v923_v29 }
 0x234   : > { %757 = vmatmul.mubr.msk.f32.vlgmr.msra.gmra.mxu1 %vm359_vm8, %v264_v56 }
 0x2f4   : > { %v632_v6 = vpop.f32.mrf.mxu1 }
 0x2f5   : > { %v648_v7 = vmul.f32 %v632_v6, %v632_v6  ;;  %v641_v11 = vsel %vm281_vm12, %v632_v6, 0.0 }
 0x2f6   : > { %v634_v8 = vpop.f32.mrf.mxu1 }
 0x2f7   : > { %v642_v9 = vsel %vm282_vm11, %v634_v8, 0.0  ;;  %v649_v10 = vmul.f32 %v634_v8, %v634_v8  ;;  %v650_v15 = vsel %vm281_vm12, %v648_v7, 0.0 }
 0x2f8   : > { %v644_v12 = vsel %vm643_vm13, %v642_v9, 0.0 }
 0x2f9   : > { %v651_v13 = vsel %vm282_vm11, %v649_v10, 0.0  ;;  %v645_v14 = vadd.f32 %v644_v12, %v641_v11 }
 0x2fa   : > { %v652_v16 = vsel %vm643_vm13, %v651_v13, 0.0 }
 0x2fb   : > { %646 = vadd.xlane.f32.xlu1 %v645_v14  ;;  %v653_v17 = vadd.f32 %v652_v16, %v650_v15 }
 0x2fd   : > { %654 = vadd.xlane.f32.xlu0 %v653_v17 }
 0x384   : > { %v647_v18 = vpop.xlane.xlu1 %646 }
 0x385   : > { %657 = vst.msk [vmem:[%s262_s28] sm:$0xff] %vm656_vm14, %v647_v18 }
 0x386   : > { %v655_v19 = vpop.xlane.xlu0 %654 }
 0x387   : > { %659 = vst.msk [vmem:[%s262_s28] sm:$0xff] %vm658_vm15, %v655_v19 }
 0x388 PF: > { %s17_s21 = sadd.s32 1, %s797_s21  }
 0x389   : > { %p14_p4 = scmp.ge.s32.totalorder %s17_s21, 4  }
 0x38b   :  { %16 = sbr.rel (!%p14_p4) target bundleno = 1 (0x1), region = 82 }

</bundles_post_ra>
